<compile_context>
chip_gen: v5e
topology: v5e:2x2
jax: 0.10.0
libtpu: 0.0.40
codegen_flags: <defaults>
</compile_context>

<pallas_src>
import jax
import jax.numpy as jnp
from jax.experimental import pallas as pl
from jax.experimental.pallas import tpu as pltpu

# Synthetic stand-ins for DataConstants
IMAGE_SIZE = (28, 28)                       # -> image_pixels = 784
OUTPUT_CLASSES = 10
IMAGE_PIXELS = IMAGE_SIZE[0] * IMAGE_SIZE[1]
H1, H2 = 512, 256

OUT_PAD = 128                               # lane-dense output block (10 -> 128)
TM_MAX = 1024                               # big tiles amortize per-step overhead
VMEM_LIMIT_BYTES = 48 * 1024 * 1024         # comfortably under v7x's 64 MiB physical


def _round_up(v, m):
    return (v + m - 1) // m * m


def _choose_tm(B):
    """Pick the batch-tile size.

    Rounded to 16 rows (bf16 packs 2 rows / sublane in the in-kernel cast) and
    sized so the grid has at least 2 steps when the batch allows it, so the
    "parallel" axis can shard across v7x's two TensorCores.
    """
    b_al = _round_up(B, 16)
    if b_al <= 32:
        return b_al                          # too small to split usefully
    return min(TM_MAX, _round_up(pl.cdiv(b_al, 2), 16))


def mlp_kernel(x_ref, w1_ref, b1_ref, w2_ref, b2_ref, w3_ref, b3_ref, o_ref):
    # x tile arrives f32 at native 784 width; cast to bf16 for the MXU here.
    x = x_ref[...].astype(jnp.bfloat16)                                # (TM, 784)
    h1 = jnp.dot(x, w1_ref[...], preferred_element_type=jnp.float32)  # (TM, H1) f32
    h1 = jnp.maximum(h1 + b1_ref[...], 0.0)                           # bias + ReLU (VPU)
    h2 = jnp.dot(h1.astype(jnp.bfloat16), w2_ref[...],
                 preferred_element_type=jnp.float32)                  # (TM, H2) f32
    h2 = jnp.maximum(h2 + b2_ref[...], 0.0)
    o = jnp.dot(h2.astype(jnp.bfloat16), w3_ref[...],
                preferred_element_type=jnp.float32) + b3_ref[...]     # (TM, OUT_PAD) f32
    o_ref[...] = o.astype(o_ref.dtype)


def prepare_params(params):
    """One-time weight prep (call once, reuse for every forward).

    Weights -> bf16 (MXU fast path, halves weight HBM bytes); fc3 columns
    padded 10 -> 128 so the final matmul / store are lane-dense; biases f32.
    """
    w1, b1, w2, b2, w3, b3 = params
    w1_p = w1.astype(jnp.bfloat16)                                        # (784, 512)
    w2_p = w2.astype(jnp.bfloat16)                                        # (512, 256)
    w3_p = jnp.pad(w3, ((0, 0), (0, OUT_PAD - OUTPUT_CLASSES))).astype(jnp.bfloat16)
    b1_p = b1.astype(jnp.float32)
    b2_p = b2.astype(jnp.float32)
    b3_p = jnp.pad(b3, ((0, 0), (0, OUT_PAD - OUTPUT_CLASSES))).astype(jnp.float32)
    return (w1_p, b1_p, w2_p, b2_p, w3_p, b3_p)


def mlp_forward(x, prepared_params):
    """x: (B, C, H, W) or (B, H*W) float32. Returns (B, OUTPUT_CLASSES) float32."""
    w1_p, b1_p, w2_p, b2_p, w3_p, b3_p = prepared_params

    x2d = x.reshape(-1, IMAGE_PIXELS)                   # == torch x.view(-1, pixels)
    B = x2d.shape[0]
    TM = _choose_tm(B)
    B_pad = _round_up(B, TM)

    # Only the batch rows are padded (no-op when B is already a multiple of TM);
    # K stays at its native 784 (= full last dim, so the BlockSpec is legal).
    x_p = jnp.pad(x2d, ((0, B_pad - B), (0, 0)))

    grid = (B_pad // TM,)
    const = lambda i: (0, 0)                            # VMEM-resident across grid steps
    resident = pl.Buffered(1)                           # single-buffer revisited blocks

    out = pl.pallas_call(
        mlp_kernel,
        out_shape=jax.ShapeDtypeStruct((B_pad, OUT_PAD), jnp.float32),
        grid_spec=pltpu.PrefetchScalarGridSpec(
            num_scalar_prefetch=0,
            grid=grid,
            in_specs=[
                pl.BlockSpec((TM, IMAGE_PIXELS), lambda i: (i, 0)),          # x: batch-tiled
                pl.BlockSpec((IMAGE_PIXELS, H1), const, pipeline_mode=resident),  # w1
                pl.BlockSpec((1, H1), const, pipeline_mode=resident),             # b1
                pl.BlockSpec((H1, H2), const, pipeline_mode=resident),            # w2
                pl.BlockSpec((1, H2), const, pipeline_mode=resident),             # b2
                pl.BlockSpec((H2, OUT_PAD), const, pipeline_mode=resident),       # w3
                pl.BlockSpec((1, OUT_PAD), const, pipeline_mode=resident),        # b3
            ],
            out_specs=pl.BlockSpec((TM, OUT_PAD), lambda i: (i, 0)),
        ),
        compiler_params=pltpu.CompilerParams(
            dimension_semantics=("parallel",),          # v7x megacore sharding
            vmem_limit_bytes=VMEM_LIMIT_BYTES,          # room for TM up to 1024
        ),
    )(x_p, w1_p, b1_p, w2_p, b2_p, w3_p, b3_p)

    return out[:B, :OUTPUT_CLASSES]


def init_params(key):
    """Deterministic init mimicking nn.Linear's uniform(-1/sqrt(fan_in), ...).

    Weights are stored as (in, out) (transposed vs. torch) so the kernel does
    plain x @ W; biases are (1, out) slabs.
    """
    def linear(key, fan_in, fan_out):
        kw, kb = jax.random.split(key)
        bound = 1.0 / jnp.sqrt(fan_in)
        w = jax.random.uniform(kw, (fan_in, fan_out), jnp.float32, -bound, bound)
        b = jax.random.uniform(kb, (1, fan_out), jnp.float32, -bound, bound)
        return w, b

    k1, k2, k3 = jax.random.split(key, 3)
    w1, b1 = linear(k1, IMAGE_PIXELS, H1)
    w2, b2 = linear(k2, H1, H2)
    w3, b3 = linear(k3, H2, OUTPUT_CLASSES)
    return (w1, b1, w2, b2, w3, b3)


if __name__ == "__main__":
    key = jax.random.PRNGKey(0)
    kx, kp = jax.random.split(key)

    # Small batch of MNIST-like images, NCHW
    x = jax.random.normal(kx, (2, 1, IMAGE_SIZE[0], IMAGE_SIZE[1]), jnp.float32)
    params = init_params(kp)
    prepared = prepare_params(params)       # one-time weight prep (hoisted out of forward)

    out = mlp_forward(x, prepared)
    out = jax.block_until_ready(out)

    # Sanity check against a plain-JAX reference using the same bf16-weight /
    # f32-accumulation recipe as the kernel.
    w1, b1, w2, b2, w3, b3 = params
    x2d = x.reshape(-1, IMAGE_PIXELS)
    xb = x2d.astype(jnp.bfloat16)
    ref = jnp.maximum(
        jnp.dot(xb, w1.astype(jnp.bfloat16), preferred_element_type=jnp.float32) + b1, 0.0)
    ref = jnp.maximum(
        jnp.dot(ref.astype(jnp.bfloat16), w2.astype(jnp.bfloat16),
                preferred_element_type=jnp.float32) + b2, 0.0)
    ref = jnp.dot(ref.astype(jnp.bfloat16), w3.astype(jnp.bfloat16),
                  preferred_element_type=jnp.float32) + b3

    assert out.shape == (2, OUTPUT_CLASSES)
    assert jnp.allclose(out, ref, atol=1e-2, rtol=1e-2), \
        f"max abs diff {jnp.max(jnp.abs(out - ref))}"

    print("KERNEL_OK")
</pallas_src>

<mosaic_0001>
module attributes {stable_mosaic.version = 11 : i64} {
  func.func @mlp_kernel(%arg0: i32, %arg1: memref<16x784xf32, #tpu.memory_space<vmem>>, %arg2: memref<784x512xbf16, #tpu.memory_space<vmem>>, %arg3: memref<1x512xf32, #tpu.memory_space<vmem>>, %arg4: memref<512x256xbf16, #tpu.memory_space<vmem>>, %arg5: memref<1x256xf32, #tpu.memory_space<vmem>>, %arg6: memref<256x128xbf16, #tpu.memory_space<vmem>>, %arg7: memref<1x128xf32, #tpu.memory_space<vmem>>, %arg8: memref<16x128xf32, #tpu.memory_space<vmem>>) attributes {dimension_semantics = [#tpu.dimension_semantics<parallel>], iteration_bounds = array<i64: 1>, scalar_prefetch = 0 : i64, scratch_operands = 0 : i64, tpu.core_type = #tpu.core_type<tc>, window_params = [{transform_indices = @transform_0, window_bounds = array<i64: 16, 784>}, {pipeline_mode = #tpu.pipeline_mode<synchronous>, transform_indices = @transform_1, window_bounds = array<i64: 784, 512>}, {pipeline_mode = #tpu.pipeline_mode<synchronous>, transform_indices = @transform_2, window_bounds = array<i64: 1, 512>}, {pipeline_mode = #tpu.pipeline_mode<synchronous>, transform_indices = @transform_3, window_bounds = array<i64: 512, 256>}, {pipeline_mode = #tpu.pipeline_mode<synchronous>, transform_indices = @transform_4, window_bounds = array<i64: 1, 256>}, {pipeline_mode = #tpu.pipeline_mode<synchronous>, transform_indices = @transform_5, window_bounds = array<i64: 256, 128>}, {pipeline_mode = #tpu.pipeline_mode<synchronous>, transform_indices = @transform_6, window_bounds = array<i64: 1, 128>}, {transform_indices = @transform_7, window_bounds = array<i64: 16, 128>}]} {
    %c0 = arith.constant 0 : index
    %c0_0 = arith.constant 0 : index
    %0 = vector.load %arg1[%c0, %c0_0] : memref<16x784xf32, #tpu.memory_space<vmem>>, vector<16x784xf32>
    %1 = arith.truncf %0 : vector<16x784xf32> to vector<16x784xbf16>
    %c0_1 = arith.constant 0 : index
    %c0_2 = arith.constant 0 : index
    %2 = vector.load %arg2[%c0_1, %c0_2] : memref<784x512xbf16, #tpu.memory_space<vmem>>, vector<784x512xbf16>
    %cst = arith.constant dense<0.000000e+00> : vector<16x512xf32>
    %3 = tpu.matmul %1, %2, %cst {dimension_numbers = #tpu.dot_dimension_numbers<[1], [0], [0], [1], [0, 0, 1, 1], [], []>} : vector<16x784xbf16>, vector<784x512xbf16>, vector<16x512xf32> -> vector<16x512xf32>
    %c0_3 = arith.constant 0 : index
    %c0_4 = arith.constant 0 : index
    %4 = vector.load %arg3[%c0_3, %c0_4] : memref<1x512xf32, #tpu.memory_space<vmem>>, vector<1x512xf32>
    %5 = vector.broadcast %4 : vector<1x512xf32> to vector<16x512xf32>
    %6 = arith.addf %3, %5 : vector<16x512xf32>
    %cst_5 = arith.constant 0.000000e+00 : f32
    %7 = vector.broadcast %cst_5 : f32 to vector<16x512xf32>
    %8 = arith.maximumf %6, %7 : vector<16x512xf32>
    %9 = arith.truncf %8 : vector<16x512xf32> to vector<16x512xbf16>
    %c0_6 = arith.constant 0 : index
    %c0_7 = arith.constant 0 : index
    %10 = vector.load %arg4[%c0_6, %c0_7] : memref<512x256xbf16, #tpu.memory_space<vmem>>, vector<512x256xbf16>
    %cst_8 = arith.constant dense<0.000000e+00> : vector<16x256xf32>
    %11 = tpu.matmul %9, %10, %cst_8 {dimension_numbers = #tpu.dot_dimension_numbers<[1], [0], [0], [1], [0, 0, 1, 1], [], []>} : vector<16x512xbf16>, vector<512x256xbf16>, vector<16x256xf32> -> vector<16x256xf32>
    %c0_9 = arith.constant 0 : index
    %c0_10 = arith.constant 0 : index
    %12 = vector.load %arg5[%c0_9, %c0_10] : memref<1x256xf32, #tpu.memory_space<vmem>>, vector<1x256xf32>
    %13 = vector.broadcast %12 : vector<1x256xf32> to vector<16x256xf32>
    %14 = arith.addf %11, %13 : vector<16x256xf32>
    %cst_11 = arith.constant 0.000000e+00 : f32
    %15 = vector.broadcast %cst_11 : f32 to vector<16x256xf32>
    %16 = arith.maximumf %14, %15 : vector<16x256xf32>
    %17 = arith.truncf %16 : vector<16x256xf32> to vector<16x256xbf16>
    %c0_12 = arith.constant 0 : index
    %c0_13 = arith.constant 0 : index
    %18 = vector.load %arg6[%c0_12, %c0_13] : memref<256x128xbf16, #tpu.memory_space<vmem>>, vector<256x128xbf16>
    %cst_14 = arith.constant dense<0.000000e+00> : vector<16x128xf32>
    %19 = tpu.matmul %17, %18, %cst_14 {dimension_numbers = #tpu.dot_dimension_numbers<[1], [0], [0], [1], [0, 0, 1, 1], [], []>} : vector<16x256xbf16>, vector<256x128xbf16>, vector<16x128xf32> -> vector<16x128xf32>
    %c0_15 = arith.constant 0 : index
    %c0_16 = arith.constant 0 : index
    %20 = vector.load %arg7[%c0_15, %c0_16] : memref<1x128xf32, #tpu.memory_space<vmem>>, vector<1x128xf32>
    %21 = vector.broadcast %20 : vector<1x128xf32> to vector<16x128xf32>
    %22 = arith.addf %19, %21 : vector<16x128xf32>
    %c0_17 = arith.constant 0 : index
    %c0_18 = arith.constant 0 : index
    %23 = vector.load %arg8[%c0_17, %c0_18] : memref<16x128xf32, #tpu.memory_space<vmem>>, vector<16x128xf32>
    tpu.vector_store %arg8[%c0_17, %c0_18], %22 {strides = array<i32>} : memref<16x128xf32, #tpu.memory_space<vmem>>, vector<16x128xf32>,
    return
  }
  func.func @transform_0(%arg0: i32) -> (i32, i32) {
    %c0_i32 = arith.constant 0 : i32
    %c0_i32_0 = arith.constant 0 : i32
    return %arg0, %c0_i32 : i32, i32
  }
  func.func @transform_1(%arg0: i32) -> (i32, i32) {
    %c0_i32 = arith.constant 0 : i32
    %c0_i32_0 = arith.constant 0 : i32
    %c0_i32_1 = arith.constant 0 : i32
    return %c0_i32, %c0_i32_0 : i32, i32
  }
  func.func @transform_2(%arg0: i32) -> (i32, i32) {
    %c0_i32 = arith.constant 0 : i32
    %c0_i32_0 = arith.constant 0 : i32
    %c0_i32_1 = arith.constant 0 : i32
    return %c0_i32, %c0_i32_0 : i32, i32
  }
  func.func @transform_3(%arg0: i32) -> (i32, i32) {
    %c0_i32 = arith.constant 0 : i32
    %c0_i32_0 = arith.constant 0 : i32
    %c0_i32_1 = arith.constant 0 : i32
    return %c0_i32, %c0_i32_0 : i32, i32
  }
  func.func @transform_4(%arg0: i32) -> (i32, i32) {
    %c0_i32 = arith.constant 0 : i32
    %c0_i32_0 = arith.constant 0 : i32
    %c0_i32_1 = arith.constant 0 : i32
    return %c0_i32, %c0_i32_0 : i32, i32
  }
  func.func @transform_5(%arg0: i32) -> (i32, i32) {
    %c0_i32 = arith.constant 0 : i32
    %c0_i32_0 = arith.constant 0 : i32
    %c0_i32_1 = arith.constant 0 : i32
    return %c0_i32, %c0_i32_0 : i32, i32
  }
  func.func @transform_6(%arg0: i32) -> (i32, i32) {
    %c0_i32 = arith.constant 0 : i32
    %c0_i32_0 = arith.constant 0 : i32
    %c0_i32_1 = arith.constant 0 : i32
    return %c0_i32, %c0_i32_0 : i32, i32
  }
  func.func @transform_7(%arg0: i32) -> (i32, i32) {
    %c0_i32 = arith.constant 0 : i32
    %c0_i32_0 = arith.constant 0 : i32
    return %arg0, %c0_i32 : i32, i32
  }
}

</mosaic_0001>

<bundles_post_ra>
// kernel: tpu_custom_call.1
= control target key start
LH: loop header
LB: loop body
LE: loop exit
PB: predicated region body
PF: predicated region fallthrough
CT: control target
= control target key end

     0   :  { %12 = vsyncpa [#allocation3], 0  ;;  %s4104_s0 = inlined_call_operand.hbm [shape: f32[16,784], index: 0, kind: input, shape index: {}]   ;;  %s4105_s1 = inlined_call_operand.hbm [shape: bf16[784,512], index: 1, kind: input, shape index: {}]   ;;  %s4106_s2 = inlined_call_operand.hbm [shape: f32[1,512], index: 2, kind: input, shape index: {}]   ;;  %s4107_s3 = inlined_call_operand.hbm [shape: bf16[512,256], index: 3, kind: input, shape index: {}]   ;;  %s4108_s4 = inlined_call_operand.vmem [shape: f32[1,256], index: 4, kind: input, shape index: {}]   ;;  %s4109_s5 = inlined_call_operand.hbm [shape: bf16[256,128], index: 5, kind: input, shape index: {}]   ;;  %s4110_s6 = inlined_call_operand.vmem [shape: f32[1,128], index: 6, kind: input, shape index: {}]   ;;  %s4111_s7 = inlined_call_operand.hbm [shape: f32[16,128], index: 7, kind: output, shape index: {}]  }
   0x1   :  { %13 = vsyncpa [#allocation6], 0 }
   0x2   :  { %14 = vsyncpa [#allocation9], 0  ;;  %s33_s26 = sshll.u32 %s4105_s1, 4  ;;  %s34_s26 = int_to_ptr.hbm [resolvable:$true] %s33_s26 }
   0x3   :  { %15 = vsyncpa [#allocation4], 0  ;;  %s3961_s27 = smov [#allocation5]   ;;  %s57_s8 = sshll.u32 %s4107_s3, 4  ;;  %s58_s8 = int_to_ptr.hbm [resolvable:$true] %s57_s8 }
   0x4   :  { %s35_s28 = sshll.u32 %s3961_s27, 4  ;;  %s3962_s9 = smov 256   ;;  %s36_s28 = int_to_ptr.vmem [resolvable:$true] %s35_s28 }
   0x5   :  { %s3963_s10 = smov 16   ;;  %s3964_s11 = smov [#allocation8]  }
   0x6   :  { %41 = dma.hbm_to_vmem [thread:$0]  %s34_s26, 25088, %s36_s28, [#allocation6], %s3962_s9, %s3962_s9, %s3963_s10  }
   0x7   :  { %s59_s12 = sshll.u32 %s3964_s11, 4  ;;  %s3965_s13 = smov 128   ;;  %s60_s12 = int_to_ptr.vmem [resolvable:$true] %s59_s12 }
   0x8   :  { %s3966_s14 = smov 8   ;;  %s20_s16 = sshll.u32 %s4104_s0, 4  ;;  %s21_s16 = int_to_ptr.hbm [resolvable:$true] %s20_s16 }
   0x9   :  { %65 = dma.hbm_to_vmem [thread:$0]  %s58_s8, 8192, %s60_s12, [#allocation9], %s3965_s13, %s3965_s13, %s3966_s14  }
   0xa   :  { %s3967_s17 = smov [#allocation2]   ;;  %s47_s20 = sshll.u32 %s4106_s2, 4  ;;  %s48_s20 = int_to_ptr.hbm [resolvable:$true] %s47_s20 }
   0xb   :  { %s22_s3 = sshll.u32 %s3967_s17, 4  ;;  %s3968_s21 = smov 896   ;;  %s23_s3 = int_to_ptr.vmem [resolvable:$true] %s22_s3 }
   0xc   :  { %s3969_s22 = smov 56   ;;  %s3970_s23 = smov [#allocation7]  }
   0xd   :  { %28 = dma.hbm_to_vmem [thread:$0]  %s21_s16, 1792, %s23_s3, [#allocation3], %s3968_s21, %s3968_s21, %s3969_s22  }
   0xe   :  { %s49_s24 = sshll.u32 %s3970_s23, 4  ;;  %s72_s27 = sshll.u32 %s4109_s5, 4  ;;  %s50_s24 = int_to_ptr.vmem [resolvable:$true] %s49_s24  ;;  %s73_s27 = int_to_ptr.hbm [resolvable:$true] %s72_s27 }
   0xf   :  { %52 = dma.hbm_to_vmem [thread:$0]  %s48_s20, 64, %s50_s24, [#allocation6]  }
  0x10   :  { %s3971_s0 = smov [#allocation10]   ;;  %s3972_s29 = smov 64  }
  0x11   :  { %s74_s28 = sshll.u32 %s3971_s0, 4  ;;  %s3973_s30 = smov 4   ;;  %s75_s28 = int_to_ptr.vmem [resolvable:$true] %s74_s28 }
  0x12   :  { %80 = dma.hbm_to_vmem [thread:$0]  %s73_s27, 2048, %s75_s28, [#allocation9], %s3972_s29, %s3972_s29, %s3973_s30  }
  0x13   :  { %3953 = dma.done.wait [#allocation3], 1792  }
  0x14   :  { %3954 = vsyncadd [#allocation3], 4294965504 }
  0x15   :  { %3955 = dma.done.wait [#allocation6], 25152  }
  0x16   :  { %3956 = vsyncadd [#allocation6], 4294942144 }
  0x17   :  { %3957 = dma.done.wait [#allocation9], 10240  }
  0x18   :  { %3958 = vsyncadd [#allocation9], 4294957056  ;;  %v2524_v0 = vld [vmem:[#allocation5 + $0xe0] sm:$0xf]  ;;  %v3548_v1 = vld [vmem:[#allocation5 + $0xec] sm:$0xf0] }
  0x19   :  { %v2652_v2 = vld [vmem:[#allocation5 + $0x1e0] sm:$0xf]  ;;  %v2525_v3 = vor.u32 %v3548_v1, %v2524_v0  ;;  %v3580_v4 = vld [vmem:[#allocation5 + $0x1ec] sm:$0xf0]  ;;  %vm1311_vm0 = vcmask 130048   ;;  %s3974_s9 = smov [#allocation11]  }
  0x1a   :  { %v2780_v5 = vld [vmem:[#allocation5 + $0x2e0] sm:$0xf]  ;;  %v3612_v6 = vld [vmem:[#allocation5 + $0x2ec] sm:$0xf0]  ;;  %v2653_v7 = vor.u32 %v3580_v4, %v2652_v2  ;;  %s2393_s10 = sshll.u32 %s3974_s9, 4  ;;  %s2395_s1 = sshll.u32 %s4111_s7, 4  ;;  %s2394_s10 = int_to_ptr.vmem [resolvable:$true] %s2393_s10  ;;  %s2396_s1 = int_to_ptr.hbm [resolvable:$true] %s2395_s1 }
  0x1b   :  { %v2781_v8 = vor.u32 %v3612_v6, %v2780_v5  ;;  %v2908_v9 = vld [vmem:[#allocation5 + $0x3e0] sm:$0xf]  ;;  %v3644_v10 = vld [vmem:[#allocation5 + $0x3ec] sm:$0xf0]  ;;  %1315 = vmatpush.bf16.msra.mxu0 %v2525_v3 }
  0x1c   :  { %v2508_v11 = vld [vmem:[#allocation5 + $0xc0] sm:$0xf]  ;;  %v2909_v12 = vor.u32 %v3644_v10, %v2908_v9  ;;  %v3544_v13 = vld [vmem:[#allocation5 + $0xcc] sm:$0xf0]  ;;  %1329 = vmatpush.bf16.msra.mxu1 %v2653_v7 }
  0x1d   :  { %v2636_v14 = vld [vmem:[#allocation5 + $0x1c0] sm:$0xf]  ;;  %v3576_v15 = vld [vmem:[#allocation5 + $0x1cc] sm:$0xf0]  ;;  %1343 = vmatpush.bf16.msra.mxu2 %v2781_v8  ;;  %v2509_v16 = vor.u32 %v3544_v13, %v2508_v11 }
  0x1e   :  { %v2637_v17 = vor.u32 %v3576_v15, %v2636_v14  ;;  %v2764_v18 = vld [vmem:[#allocation5 + $0x2c0] sm:$0xf]  ;;  %v3608_v19 = vld [vmem:[#allocation5 + $0x2cc] sm:$0xf0]  ;;  %1357 = vmatpush.bf16.msra.mxu3 %v2909_v12 }
  0x1f   :  { %v2892_v20 = vld [vmem:[#allocation5 + $0x3c0] sm:$0xf]  ;;  %v2765_v21 = vor.u32 %v3608_v19, %v2764_v18  ;;  %v3640_v22 = vld [vmem:[#allocation5 + $0x3cc] sm:$0xf0]  ;;  %1316 = vmatpush.bf16.msra.mxu0 %v2509_v16 }
  0x20   :  { %v2492_v23 = vld [vmem:[#allocation5 + $0xa0] sm:$0xf]  ;;  %v3540_v24 = vld [vmem:[#allocation5 + $0xac] sm:$0xf0]  ;;  %v2893_v25 = vor.u32 %v3640_v22, %v2892_v20  ;;  %1330 = vmatpush.bf16.msra.mxu1 %v2637_v17 }
  0x21   :  { %v2620_v26 = vld [vmem:[#allocation5 + $0x1a0] sm:$0xf]  ;;  %v3572_v27 = vld [vmem:[#allocation5 + $0x1ac] sm:$0xf0]  ;;  %v2493_v29 = vor.u32 %v3540_v24, %v2492_v23  ;;  %1344 = vmatpush.bf16.msra.mxu2 %v2765_v21 }
  0x22   :  { %v2748_v28 = vld [vmem:[#allocation5 + $0x2a0] sm:$0xf]  ;;  %v3604_v30 = vld [vmem:[#allocation5 + $0x2ac] sm:$0xf0]  ;;  %v2621_v33 = vor.u32 %v3572_v27, %v2620_v26  ;;  %1358 = vmatpush.bf16.msra.mxu3 %v2893_v25 }
  0x23   :  { %v2876_v31 = vld [vmem:[#allocation5 + $0x3a0] sm:$0xf]  ;;  %v3636_v32 = vld [vmem:[#allocation5 + $0x3ac] sm:$0xf0]  ;;  %v2749_v34 = vor.u32 %v3604_v30, %v2748_v28  ;;  %1317 = vmatpush.bf16.msra.mxu0 %v2493_v29 }
  0x24   :  { %v2476_v35 = vld [vmem:[#allocation5 + $0x80] sm:$0xf]  ;;  %v3536_v36 = vld [vmem:[#allocation5 + $0x8c] sm:$0xf0]  ;;  %v2877_v38 = vor.u32 %v3636_v32, %v2876_v31  ;;  %1331 = vmatpush.bf16.msra.mxu1 %v2621_v33  ;;  %v3546_v32 = vld [vmem:[#allocation5 + $0xe4] sm:$0xf] }
  0x25   :  { %v2604_v37 = vld [vmem:[#allocation5 + $0x180] sm:$0xf]  ;;  %v3568_v39 = vld [vmem:[#allocation5 + $0x18c] sm:$0xf0]  ;;  %v2477_v44 = vor.u32 %v3536_v36, %v2476_v35  ;;  %1345 = vmatpush.bf16.msra.mxu2 %v2749_v34  ;;  %v2526_v33 = vld [vmem:[#allocation5 + $0xf0] sm:$0xf0] }
  0x26   :  { %v2732_v40 = vld [vmem:[#allocation5 + $0x280] sm:$0xf]  ;;  %v3600_v41 = vld [vmem:[#allocation5 + $0x28c] sm:$0xf0]  ;;  %v2605_v45 = vor.u32 %v3568_v39, %v2604_v37  ;;  %1359 = vmatpush.bf16.msra.mxu3 %v2877_v38  ;;  %v113_v36 = vld [vmem:[#allocation2 + $0x48] sm:$0xff] }
  0x27   :  { %v2860_v42 = vld [vmem:[#allocation5 + $0x380] sm:$0xf]  ;;  %v3632_v43 = vld [vmem:[#allocation5 + $0x38c] sm:$0xf0]  ;;  %v2733_v46 = vor.u32 %v3600_v41, %v2732_v40  ;;  %1318 = vmatpush.bf16.msra.mxu0 %v2477_v44  ;;  %v3578_v41 = vld [vmem:[#allocation5 + $0x1e4] sm:$0xf] }
  0x28   :  { %v2460_v47 = vld [vmem:[#allocation5 + $0x60] sm:$0xf]  ;;  %v3532_v48 = vld [vmem:[#allocation5 + $0x6c] sm:$0xf0]  ;;  %v2861_v50 = vor.u32 %v3632_v43, %v2860_v42  ;;  %1332 = vmatpush.bf16.msra.mxu1 %v2605_v45  ;;  %v111_v43 = vld [vmem:[#allocation2 + $0x38] sm:$0xff] }
  0x29   :  { %v2588_v49 = vld [vmem:[#allocation5 + $0x160] sm:$0xf]  ;;  %v3564_v51 = vld [vmem:[#allocation5 + $0x16c] sm:$0xf0]  ;;  %v2461_v56 = vor.u32 %v3532_v48, %v2460_v47  ;;  %1346 = vmatpush.bf16.msra.mxu2 %v2733_v46  ;;  %v2654_v46 = vld [vmem:[#allocation5 + $0x1f0] sm:$0xf0] }
  0x2a   :  { %v2716_v52 = vld [vmem:[#allocation5 + $0x260] sm:$0xf]  ;;  %v3596_v53 = vld [vmem:[#allocation5 + $0x26c] sm:$0xf0]  ;;  %v2589_v57 = vor.u32 %v3564_v51, %v2588_v49  ;;  %1360 = vmatpush.bf16.msra.mxu3 %v2861_v50  ;;  %v107_v47 = vld [vmem:[#allocation2 + $0x18] sm:$0xff]  ;;  %v2529_v50 = vor.u32 %v3546_v32, %v2526_v33 }
  0x2b   :  { %v2844_v54 = vld [vmem:[#allocation5 + $0x360] sm:$0xf]  ;;  %v3628_v55 = vld [vmem:[#allocation5 + $0x36c] sm:$0xf0]  ;;  %v2717_v58 = vor.u32 %v3596_v53, %v2716_v52  ;;  %1319 = vmatpush.bf16.msra.mxu0 %v2461_v56 }
  0x2c   :  { %v2444_v59 = vld [vmem:[#allocation5 + $0x40] sm:$0xf]  ;;  %v3528_v60 = vld [vmem:[#allocation5 + $0x4c] sm:$0xf0]  ;;  %v2845_v62 = vor.u32 %v3628_v55, %v2844_v54  ;;  %1333 = vmatpush.bf16.msra.mxu1 %v2589_v57  ;;  %v3542_v57 = vld [vmem:[#allocation5 + $0xc4] sm:$0xf] }
  0x2d   :  { %v2572_v61 = vld [vmem:[#allocation5 + $0x140] sm:$0xf]  ;;  %v3560_v63 = vld [vmem:[#allocation5 + $0x14c] sm:$0xf0]  ;;  %v2445_v4 = vor.u32 %v3528_v60, %v2444_v59  ;;  %1347 = vmatpush.bf16.msra.mxu2 %v2717_v58  ;;  %v2510_v58 = vld [vmem:[#allocation5 + $0xd0] sm:$0xf0] }
  0x2e   :  { %v2700_v0 = vld [vmem:[#allocation5 + $0x240] sm:$0xf]  ;;  %v3592_v1 = vld [vmem:[#allocation5 + $0x24c] sm:$0xf0]  ;;  %v2573_v6 = vor.u32 %v3560_v63, %v2572_v61  ;;  %1361 = vmatpush.bf16.msra.mxu3 %v2845_v62  ;;  %v105_v61 = vld [vmem:[#allocation2 + $0x8] sm:$0xff]  ;;  %v2657_v63 = vor.u32 %v3578_v41, %v2654_v46 }
  0x2f   :  { %v2828_v2 = vld [vmem:[#allocation5 + $0x340] sm:$0xf]  ;;  %v3624_v3 = vld [vmem:[#allocation5 + $0x34c] sm:$0xf0]  ;;  %v2701_v7 = vor.u32 %v3592_v1, %v2700_v0  ;;  %1320 = vmatpush.bf16.msra.mxu0 %v2445_v4  ;;  %v3574_v1 = vld [vmem:[#allocation5 + $0x1c4] sm:$0xf]  ;;  %v2513_v4 = vor.u32 %v3542_v57, %v2510_v58 }
  0x30   :  { %v2428_v5 = vld [vmem:[#allocation5 + $0x20] sm:$0xf]  ;;  %v3524_v8 = vld [vmem:[#allocation5 + $0x2c] sm:$0xf0]  ;;  %v2829_v11 = vor.u32 %v3624_v3, %v2828_v2  ;;  %1334 = vmatpush.bf16.msra.mxu1 %v2573_v6  ;;  %v2638_v2 = vld [vmem:[#allocation5 + $0x1d0] sm:$0xf0] }
  0x31   :  { %v2556_v9 = vld [vmem:[#allocation5 + $0x120] sm:$0xf]  ;;  %v3556_v10 = vld [vmem:[#allocation5 + $0x12c] sm:$0xf0]  ;;  %v2429_v18 = vor.u32 %v3524_v8, %v2428_v5  ;;  %1348 = vmatpush.bf16.msra.mxu2 %v2701_v7  ;;  %v2590_v41 = vld [vmem:[#allocation5 + $0x170] sm:$0xf0] }
  0x32   :  { %v2684_v12 = vld [vmem:[#allocation5 + $0x220] sm:$0xf]  ;;  %v3588_v13 = vld [vmem:[#allocation5 + $0x22c] sm:$0xf0]  ;;  %v2557_v23 = vor.u32 %v3556_v10, %v2556_v9  ;;  %1362 = vmatpush.bf16.msra.mxu3 %v2829_v11  ;;  %v3538_v10 = vld [vmem:[#allocation5 + $0xa4] sm:$0xf] }
  0x33   :  { %v2812_v14 = vld [vmem:[#allocation5 + $0x320] sm:$0xf]  ;;  %v3620_v15 = vld [vmem:[#allocation5 + $0x32c] sm:$0xf0]  ;;  %v2685_v24 = vor.u32 %v3588_v13, %v2684_v12  ;;  %1321 = vmatpush.bf16.msra.mxu0 %v2429_v18  ;;  %v2494_v11 = vld [vmem:[#allocation5 + $0xb0] sm:$0xf0]  ;;  %v2641_v12 = vor.u32 %v3574_v1, %v2638_v2 }
  0x34   :  { %v2412_v16 = vld [vmem:[#allocation5] sm:$0xf]  ;;  %v3520_v17 = vld [vmem:[#allocation5 + $0xc] sm:$0xf0]  ;;  %v2813_v28 = vor.u32 %v3620_v15, %v2812_v14  ;;  %1335 = vmatpush.bf16.msra.mxu1 %v2557_v23  ;;  %v3570_v14 = vld [vmem:[#allocation5 + $0x1a4] sm:$0xf] }
  0x35   :  { %v2540_v19 = vld [vmem:[#allocation5 + $0x100] sm:$0xf]  ;;  %v3552_v20 = vld [vmem:[#allocation5 + $0x10c] sm:$0xf0]  ;;  %v2413_v35 = vor.u32 %v3520_v17, %v2412_v16  ;;  %1349 = vmatpush.bf16.msra.mxu2 %v2685_v24  ;;  %v2622_v15 = vld [vmem:[#allocation5 + $0x1b0] sm:$0xf0]  ;;  %v2497_v17 = vor.u32 %v3538_v10, %v2494_v11 }
  0x36   :  { %v2668_v21 = vld [vmem:[#allocation5 + $0x200] sm:$0xf]  ;;  %v3584_v22 = vld [vmem:[#allocation5 + $0x20c] sm:$0xf0]  ;;  %v2541_v39 = vor.u32 %v3552_v20, %v2540_v19  ;;  %1363 = vmatpush.bf16.msra.mxu3 %v2813_v28  ;;  %v2478_v23 = vld [vmem:[#allocation5 + $0x90] sm:$0xf0]  ;;  %v2625_v24 = vor.u32 %v3570_v14, %v2622_v15 }
  0x37   :  { %v2796_v25 = vld [vmem:[#allocation5 + $0x300] sm:$0xf]  ;;  %v3616_v26 = vld [vmem:[#allocation5 + $0x30c] sm:$0xf0]  ;;  %v2669_v40 = vor.u32 %v3584_v22, %v2668_v21  ;;  %1322 = vmatpush.bf16.msra.mxu0 %v2413_v35  ;;  %v3534_v22 = vld [vmem:[#allocation5 + $0x84] sm:$0xf] }
  0x38   :  { %v3036_v27 = vld [vmem:[#allocation5 + $0x4e0] sm:$0xf]  ;;  %v3676_v29 = vld [vmem:[#allocation5 + $0x4ec] sm:$0xf0]  ;;  %v2797_v44 = vor.u32 %v3616_v26, %v2796_v25  ;;  %1336 = vmatpush.bf16.msra.mxu1 %v2541_v39  ;;  %v3566_v26 = vld [vmem:[#allocation5 + $0x184] sm:$0xf] }
  0x39   :  { %v3164_v30 = vld [vmem:[#allocation5 + $0x5e0] sm:$0xf]  ;;  %v3708_v31 = vld [vmem:[#allocation5 + $0x5ec] sm:$0xf0]  ;;  %v3037_v45 = vor.u32 %v3676_v29, %v3036_v27  ;;  %1350 = vmatpush.bf16.msra.mxu2 %v2669_v40  ;;  %v2606_v27 = vld [vmem:[#allocation5 + $0x190] sm:$0xf0]  ;;  %v2481_v29 = vor.u32 %v3534_v22, %v2478_v23 }
  0x3a   :  { %v106_v34 = vld [vmem:[#allocation2 + $0x10] sm:$0xff]  ;;  %v3712_v38 = vld [vmem:[#allocation5 + $0x60c] sm:$0xf0]  ;;  %v3165_v49 = vor.u32 %v3708_v31, %v3164_v30  ;;  %1364 = vmatpush.bf16.msra.mxu3 %v2797_v44  ;;  %v2462_v35 = vld [vmem:[#allocation5 + $0x70] sm:$0xf0] }
  0x3b   :  { %v3180_v37 = vld [vmem:[#allocation5 + $0x600] sm:$0xf]  ;;  %v104_v42 = vld [vmem:[#allocation2] sm:$0xff]  ;;  %v4033_v54 = vpack.c.bf16 %v113_v36, %v106_v34  ;;  %1371 = vmatpush.bf16.msrb.mxu0 %v3037_v45  ;;  %v3530_v34 = vld [vmem:[#allocation5 + $0x64] sm:$0xf] }
  0x3c   :  { %v114_v48 = vld [vmem:[#allocation2 + $0x50] sm:$0xff]  ;;  %v3672_v52 = vld [vmem:[#allocation5 + $0x4cc] sm:$0xf0]  ;;  %v4035_v55 = vpack.c.bf16 %v111_v43, %v104_v42  ;;  %v3181_v59 = vor.u32 %v3712_v38, %v3180_v37  ;;  %1385 = vmatpush.bf16.msrb.mxu1 %v3165_v49  ;;  %v117_v37 = vld [vmem:[#allocation2 + $0x68] sm:$0xff]  ;;  %v2609_v38 = vor.u32 %v3566_v26, %v2606_v27  ;;  %v2465_v43 = vor.u32 %v3530_v34, %v2462_v35 }
  0x3d   :  { %v3020_v51 = vld [vmem:[#allocation5 + $0x4c0] sm:$0xf]  ;;  %v3704_v56 = vld [vmem:[#allocation5 + $0x5cc] sm:$0xf0]  ;;  %v4037_v60 = vpack.c.bf16 %v114_v48, %v107_v47  ;;  %1351 = vmatmul.bf16.vlgmr.msra.gmra.mxu2 %v4033_v54  ;;  %v3562_v40 = vld [vmem:[#allocation5 + $0x164] sm:$0xf] }
  0x3e   :  { %v3148_v53 = vld [vmem:[#allocation5 + $0x5c0] sm:$0xf]  ;;  %v112_v62 = vld [vmem:[#allocation2 + $0x40] sm:$0xff]  ;;  %v3021_v0 = vor.u32 %v3672_v52, %v3020_v51  ;;  %1413 = vmatpush.bf16.msrb.mxu3 %v2529_v50  ;;  %1323 = vmatmul.bf16.vlgmr.msra.gmra.mxu0 %v4035_v55  ;;  %v3526_v48 = vld [vmem:[#allocation5 + $0x44] sm:$0xf]  ;;  %v2593_v51 = vor.u32 %v3562_v40, %v2590_v41 }
  0x3f   :  { %v3149_v3 = vor.u32 %v3704_v56, %v3148_v53  ;;  %v3004_v5 = vld [vmem:[#allocation5 + $0x4a0] sm:$0xf]  ;;  %v3668_v6 = vld [vmem:[#allocation5 + $0x4ac] sm:$0xf0]  ;;  %v4041_v8 = vpack.c.bf16 %v112_v62, %v105_v61  ;;  %1406 = vmatpush.bf16.msrb.mxu2 %v3181_v59  ;;  %1365 = vmatmul.bf16.vlgmr.msra.gmra.mxu3 %v4037_v60  ;;  %v2446_v49 = vld [vmem:[#allocation5 + $0x50] sm:$0xf0] }
  0x40   :  { %v3132_v7 = vld [vmem:[#allocation5 + $0x5a0] sm:$0xf]  ;;  %v3700_v9 = vld [vmem:[#allocation5 + $0x5ac] sm:$0xf0]  ;;  %1372 = vmatpush.bf16.msrb.mxu0 %v3021_v0  ;;  %v3005_v13 = vor.u32 %v3668_v6, %v3004_v5  ;;  %v3558_v53 = vld [vmem:[#allocation5 + $0x144] sm:$0xf]  ;;  %v2449_v58 = vor.u32 %v3526_v48, %v2446_v49 }
  0x41   :  { %1386 = vmatpush.bf16.msrb.mxu1 %v3149_v3  ;;  %v3133_v16 = vor.u32 %v3700_v9, %v3132_v7  ;;  %v2988_v18 = vld [vmem:[#allocation5 + $0x480] sm:$0xf]  ;;  %v3664_v19 = vld [vmem:[#allocation5 + $0x48c] sm:$0xf0]  ;;  %v2574_v56 = vld [vmem:[#allocation5 + $0x150] sm:$0xf0] }
  0x42   :  { %1414 = vmatpush.bf16.msrb.mxu3 %v2513_v4  ;;  %v3116_v20 = vld [vmem:[#allocation5 + $0x580] sm:$0xf]  ;;  %1337 = vmatmul.bf16.vlgmr.msra.gmra.mxu1 %v4041_v8  ;;  %v3696_v21 = vld [vmem:[#allocation5 + $0x58c] sm:$0xf0]  ;;  %v2989_v25 = vor.u32 %v3664_v19, %v2988_v18  ;;  %v3522_v0 = vld [vmem:[#allocation5 + $0x24] sm:$0xf]  ;;  %v2577_v4 = vor.u32 %v3558_v53, %v2574_v56 }
  0x43   :  { %1427 = vmatpush.bf16.msra.mxu2 %v2657_v63  ;;  %v3117_v28 = vor.u32 %v3696_v21, %v3116_v20  ;;  %v2972_v30 = vld [vmem:[#allocation5 + $0x460] sm:$0xf]  ;;  %v3660_v31 = vld [vmem:[#allocation5 + $0x46c] sm:$0xf0]  ;;  %v2430_v1 = vld [vmem:[#allocation5 + $0x30] sm:$0xf0] }
  0x44   :  { %1373 = vmatpush.bf16.msrb.mxu0 %v3005_v13  ;;  %v3100_v32 = vld [vmem:[#allocation5 + $0x560] sm:$0xf]  ;;  %v3692_v33 = vld [vmem:[#allocation5 + $0x56c] sm:$0xf0]  ;;  %v2973_v39 = vor.u32 %v3660_v31, %v2972_v30  ;;  %v3554_v2 = vld [vmem:[#allocation5 + $0x124] sm:$0xf]  ;;  %v2433_v11 = vor.u32 %v3522_v0, %v2430_v1 }
  0x45   :  { %1387 = vmatpush.bf16.msrb.mxu1 %v3133_v16  ;;  %v110_v36 = vld [vmem:[#allocation2 + $0x30] sm:$0xff]  ;;  %v3101_v42 = vor.u32 %v3692_v33, %v3100_v32  ;;  %v3656_v45 = vld [vmem:[#allocation5 + $0x44c] sm:$0xf0]  ;;  %v2558_v3 = vld [vmem:[#allocation5 + $0x130] sm:$0xf0] }
  0x46   :  { %1415 = vmatpush.bf16.msrb.mxu3 %v2497_v17  ;;  %v2956_v44 = vld [vmem:[#allocation5 + $0x440] sm:$0xf]  ;;  %v3688_v47 = vld [vmem:[#allocation5 + $0x54c] sm:$0xf0]  ;;  %v4045_v50 = vpack.c.bf16 %v117_v37, %v110_v36  ;;  %v3518_v13 = vld [vmem:[#allocation5 + $0x4] sm:$0xf]  ;;  %v2561_v21 = vor.u32 %v3554_v2, %v2558_v3 }
  0x47   :  { %1428 = vmatpush.bf16.msra.mxu2 %v2641_v12  ;;  %v3084_v46 = vld [vmem:[#allocation5 + $0x540] sm:$0xf]  ;;  %v2957_v52 = vor.u32 %v3656_v45, %v2956_v44  ;;  %v3652_v61 = vld [vmem:[#allocation5 + $0x42c] sm:$0xf0]  ;;  %v2414_v14 = vld [vmem:[#allocation5 + $0x10] sm:$0xf0] }
  0x48   :  { %1374 = vmatpush.bf16.msrb.mxu0 %v2989_v25  ;;  %v3085_v57 = vor.u32 %v3688_v47, %v3084_v46  ;;  %v2940_v59 = vld [vmem:[#allocation5 + $0x420] sm:$0xf]  ;;  %v3684_v63 = vld [vmem:[#allocation5 + $0x52c] sm:$0xf0]  ;;  %v3610_v15 = vld [vmem:[#allocation5 + $0x2e4] sm:$0xf]  ;;  %v2417_v27 = vor.u32 %v3518_v13, %v2414_v14 }
  0x49   :  { %1388 = vmatpush.bf16.msrb.mxu1 %v3117_v28  ;;  %v3068_v62 = vld [vmem:[#allocation5 + $0x520] sm:$0xf]  ;;  %v2941_v5 = vor.u32 %v3652_v61, %v2940_v59  ;;  %v3648_v7 = vld [vmem:[#allocation5 + $0x40c] sm:$0xf0]  ;;  %v2782_v16 = vld [vmem:[#allocation5 + $0x2f0] sm:$0xf0] }
  0x4a   :  { %1416 = vmatpush.bf16.msrb.mxu3 %v2481_v29  ;;  %v2924_v6 = vld [vmem:[#allocation5 + $0x400] sm:$0xf]  ;;  %v3069_v10 = vor.u32 %v3684_v63, %v3068_v62  ;;  %v3680_v12 = vld [vmem:[#allocation5 + $0x50c] sm:$0xf0]  ;;  %v3642_v17 = vld [vmem:[#allocation5 + $0x3e4] sm:$0xf]  ;;  %v2785_v31 = vor.u32 %v3610_v15, %v2782_v16 }
  0x4b   :  { %1429 = vmatpush.bf16.msra.mxu2 %v2625_v24  ;;  %v3052_v9 = vld [vmem:[#allocation5 + $0x500] sm:$0xf]  ;;  %v2910_v18 = vld [vmem:[#allocation5 + $0x3f0] sm:$0xf0]  ;;  %v3674_v19 = vld [vmem:[#allocation5 + $0x4e4] sm:$0xf]  ;;  %v2925_v22 = vor.u32 %v3648_v7, %v2924_v6 }
  0x4c   :  { %1375 = vmatpush.bf16.msrb.mxu0 %v2973_v39  ;;  %v3038_v20 = vld [vmem:[#allocation5 + $0x4f0] sm:$0xf0]  ;;  %v115_v24 = vld [vmem:[#allocation2 + $0x58] sm:$0xff]  ;;  %v3550_v25 = vld [vmem:[#allocation5 + $0x104] sm:$0xf]  ;;  %v3053_v26 = vor.u32 %v3680_v12, %v3052_v9  ;;  %v2913_v32 = vor.u32 %v3642_v17, %v2910_v18 }
  0x4d   :  { %1389 = vmatpush.bf16.msrb.mxu1 %v3101_v42  ;;  %3194 = vmatmul.msk.bf16.vlgmr.msrb.gmra.mxu2 %vm1311_vm0, %v4045_v50  ;;  %v108_v23 = vld [vmem:[#allocation2 + $0x20] sm:$0xff]  ;;  %v109_v29 = vld [vmem:[#allocation2 + $0x28] sm:$0xff]  ;;  %v3706_v33 = vld [vmem:[#allocation5 + $0x5e4] sm:$0xf]  ;;  %v3041_v36 = vor.u32 %v3674_v19, %v3038_v20 }
  0x4e   :  { %1417 = vmatpush.bf16.msrb.mxu3 %v2465_v43  ;;  %v2542_v28 = vld [vmem:[#allocation5 + $0x110] sm:$0xf0]  ;;  %v3606_v35 = vld [vmem:[#allocation5 + $0x2c4] sm:$0xf]  ;;  %v4049_v37 = vpack.c.bf16 %v115_v24, %v108_v23 }
  0x4f   :  { %1430 = vmatpush.bf16.msra.mxu2 %v2609_v38  ;;  %v116_v30 = vld [vmem:[#allocation2 + $0x60] sm:$0xff]  ;;  %v3638_v39 = vld [vmem:[#allocation5 + $0x3c4] sm:$0xf]  ;;  %v2545_v41 = vor.u32 %v3550_v25, %v2542_v28 }
  0x50   :  { %1376 = vmatpush.bf16.msrb.mxu0 %v2957_v52  ;;  %v3166_v34 = vld [vmem:[#allocation5 + $0x5f0] sm:$0xf0]  ;;  %v4051_v42 = vpack.c.bf16 %v116_v30, %v109_v29  ;;  %v3670_v43 = vld [vmem:[#allocation5 + $0x4c4] sm:$0xf] }
  0x51   :  { %1390 = vmatpush.bf16.msrb.mxu1 %v3085_v57  ;;  %v2766_v38 = vld [vmem:[#allocation5 + $0x2d0] sm:$0xf0]  ;;  %v3169_v45 = vor.u32 %v3706_v33, %v3166_v34  ;;  %v3702_v48 = vld [vmem:[#allocation5 + $0x5c4] sm:$0xf] }
  0x52   :  { %1418 = vmatpush.bf16.msrb.mxu3 %v2449_v58  ;;  %v2894_v40 = vld [vmem:[#allocation5 + $0x3d0] sm:$0xf0]  ;;  %v2769_v46 = vor.u32 %v3606_v35, %v2766_v38  ;;  %v3634_v56 = vld [vmem:[#allocation5 + $0x3a4] sm:$0xf] }
  0x53   :  { %1431 = vmatpush.bf16.msra.mxu2 %v2593_v51  ;;  %v3022_v44 = vld [vmem:[#allocation5 + $0x4d0] sm:$0xf0]  ;;  %v2897_v47 = vor.u32 %v3638_v39, %v2894_v40  ;;  %v3602_v51 = vld [vmem:[#allocation5 + $0x2a4] sm:$0xf] }
  0x54   :  { %1377 = vmatpush.bf16.msrb.mxu0 %v2941_v5  ;;  %v3150_v49 = vld [vmem:[#allocation5 + $0x5d0] sm:$0xf0]  ;;  %v3025_v52 = vor.u32 %v3670_v43, %v3022_v44  ;;  %v3666_v58 = vld [vmem:[#allocation5 + $0x4a4] sm:$0xf] }
  0x55   :  { %1391 = vmatpush.bf16.msrb.mxu1 %v3069_v10  ;;  %v2750_v53 = vld [vmem:[#allocation5 + $0x2b0] sm:$0xf0]  ;;  %v3153_v61 = vor.u32 %v3702_v48, %v3150_v49  ;;  %v3698_v0 = vld [vmem:[#allocation5 + $0x5a4] sm:$0xf] }
  0x56   :  { %1419 = vmatpush.bf16.msrb.mxu3 %v2433_v11  ;;  %v2878_v57 = vld [vmem:[#allocation5 + $0x3b0] sm:$0xf0]  ;;  %v2753_v62 = vor.u32 %v3602_v51, %v2750_v53  ;;  %v3598_v2 = vld [vmem:[#allocation5 + $0x284] sm:$0xf] }
  0x57   :  { %1432 = vmatpush.bf16.msra.mxu2 %v2577_v4  ;;  %v3006_v59 = vld [vmem:[#allocation5 + $0x4b0] sm:$0xf0]  ;;  %v2881_v63 = vor.u32 %v3634_v56, %v2878_v57  ;;  %v3630_v5 = vld [vmem:[#allocation5 + $0x384] sm:$0xf] }
  0x58   :  { %1378 = vmatpush.bf16.msrb.mxu0 %v2925_v22  ;;  %v3134_v1 = vld [vmem:[#allocation5 + $0x5b0] sm:$0xf0]  ;;  %v3009_v3 = vor.u32 %v3666_v58, %v3006_v59  ;;  %v3662_v7 = vld [vmem:[#allocation5 + $0x484] sm:$0xf] }
  0x59   :  { %1392 = vmatpush.bf16.msrb.mxu1 %v3053_v26  ;;  %v2734_v4 = vld [vmem:[#allocation5 + $0x290] sm:$0xf0]  ;;  %v3137_v10 = vor.u32 %v3698_v0, %v3134_v1  ;;  %v3694_v13 = vld [vmem:[#allocation5 + $0x584] sm:$0xf]  ;;  %v2532_v0 = vld [vmem:[#allocation5 + $0xe8] sm:$0xf] }
  0x5a   :  { %1420 = vmatpush.bf16.msrb.mxu3 %v2417_v27  ;;  %v2862_v6 = vld [vmem:[#allocation5 + $0x390] sm:$0xf0]  ;;  %v2737_v11 = vor.u32 %v3598_v2, %v2734_v4  ;;  %v3594_v15 = vld [vmem:[#allocation5 + $0x264] sm:$0xf]  ;;  %v3549_v1 = vld [vmem:[#allocation5 + $0xf4] sm:$0xf0] }
  0x5b   :  { %1433 = vmatpush.bf16.msra.mxu2 %v2561_v21  ;;  %1379 = vmatmul.bf16.vlgmr.msrb.gmra.mxu0 %v4049_v37  ;;  %v2990_v9 = vld [vmem:[#allocation5 + $0x490] sm:$0xf0]  ;;  %v2865_v12 = vor.u32 %v3630_v5, %v2862_v6  ;;  %v3626_v18 = vld [vmem:[#allocation5 + $0x364] sm:$0xf]  ;;  %v2660_v2 = vld [vmem:[#allocation5 + $0x1e8] sm:$0xf] }
  0x5c   :  { %1441 = vmatpush.bf16.msra.mxu0 %v2785_v31  ;;  %1393 = vmatmul.bf16.vlgmr.msrb.gmra.mxu1 %v4051_v42  ;;  %v3118_v14 = vld [vmem:[#allocation5 + $0x590] sm:$0xf0]  ;;  %v2993_v16 = vor.u32 %v3662_v7, %v2990_v9  ;;  %v3658_v20 = vld [vmem:[#allocation5 + $0x464] sm:$0xf]  ;;  %v3581_v4 = vld [vmem:[#allocation5 + $0x1f4] sm:$0xf0] }
  0x5d   :  { %1455 = vmatpush.bf16.msra.mxu1 %v2913_v32  ;;  %1421 = vmatmul.bf16.vlgmr.msrb.gmra.mxu3 %v4035_v55  ;;  %v2718_v17 = vld [vmem:[#allocation5 + $0x270] sm:$0xf0]  ;;  %v3121_v22 = vor.u32 %v3694_v13, %v3118_v14  ;;  %v3690_v25 = vld [vmem:[#allocation5 + $0x564] sm:$0xf]  ;;  %v2533_v13 = vor.u32 %v3549_v1, %v2532_v0  ;;  %v2916_v14 = vld [vmem:[#allocation5 + $0x3e8] sm:$0xf] }
  0x5e   :  { %1469 = vmatpush.bf16.msra.mxu3 %v3041_v36  ;;  %v2846_v19 = vld [vmem:[#allocation5 + $0x370] sm:$0xf0]  ;;  %v2721_v23 = vor.u32 %v3594_v15, %v2718_v17  ;;  %v3590_v27 = vld [vmem:[#allocation5 + $0x244] sm:$0xf]  ;;  %v3645_v15 = vld [vmem:[#allocation5 + $0x3f4] sm:$0xf0]  ;;  %v2661_v17 = vor.u32 %v3581_v4, %v2660_v2 }
  0x5f   :  { %1434 = vmatpush.bf16.msra.mxu2 %v2545_v41  ;;  %v2974_v21 = vld [vmem:[#allocation5 + $0x470] sm:$0xf0]  ;;  %v2849_v24 = vor.u32 %v3626_v18, %v2846_v19  ;;  %v3622_v30 = vld [vmem:[#allocation5 + $0x344] sm:$0xf]  ;;  %v3545_v18 = vld [vmem:[#allocation5 + $0xd4] sm:$0xf0] }
  0x60   :  { %1442 = vmatpush.bf16.msra.mxu0 %v2769_v46  ;;  %v3102_v26 = vld [vmem:[#allocation5 + $0x570] sm:$0xf0]  ;;  %v2977_v28 = vor.u32 %v3658_v20, %v2974_v21  ;;  %v3654_v32 = vld [vmem:[#allocation5 + $0x444] sm:$0xf]  ;;  %v2788_v20 = vld [vmem:[#allocation5 + $0x2e8] sm:$0xf] }
  0x61   :  { %1456 = vmatpush.bf16.msra.mxu1 %v2897_v47  ;;  %v2702_v29 = vld [vmem:[#allocation5 + $0x250] sm:$0xf0]  ;;  %v3105_v34 = vor.u32 %v3690_v25, %v3102_v26  ;;  %v3686_v38 = vld [vmem:[#allocation5 + $0x544] sm:$0xf]  ;;  %v3613_v21 = vld [vmem:[#allocation5 + $0x2f4] sm:$0xf0]  ;;  %v2917_v25 = vor.u32 %v3645_v15, %v2916_v14 }
  0x62   :  { %1470 = vmatpush.bf16.msra.mxu3 %v3025_v52  ;;  %1435 = vmatmul.bf16.vlgmr.msra.gmra.mxu2 %v4041_v8  ;;  %v2830_v31 = vld [vmem:[#allocation5 + $0x350] sm:$0xf0]  ;;  %v2705_v35 = vor.u32 %v3590_v27, %v2702_v29  ;;  %v3586_v40 = vld [vmem:[#allocation5 + $0x224] sm:$0xf]  ;;  %v2900_v27 = vld [vmem:[#allocation5 + $0x3c8] sm:$0xf] }
  0x63   :  { %1483 = vmatpush.bf16.msrb.mxu2 %v3169_v45  ;;  %v2958_v33 = vld [vmem:[#allocation5 + $0x450] sm:$0xf0]  ;;  %v2833_v36 = vor.u32 %v3622_v30, %v2830_v31  ;;  %v3618_v44 = vld [vmem:[#allocation5 + $0x324] sm:$0xf]  ;;  %v2500_v29 = vld [vmem:[#allocation5 + $0xa8] sm:$0xf]  ;;  %v2789_v30 = vor.u32 %v3613_v21, %v2788_v20 }
  0x64   :  { %1443 = vmatpush.bf16.msra.mxu0 %v2753_v62  ;;  %v3086_v39 = vld [vmem:[#allocation5 + $0x550] sm:$0xf0]  ;;  %v2961_v41 = vor.u32 %v3654_v32, %v2958_v33  ;;  %v3650_v46 = vld [vmem:[#allocation5 + $0x424] sm:$0xf]  ;;  %v3541_v32 = vld [vmem:[#allocation5 + $0xb4] sm:$0xf0] }
  0x65   :  { %1457 = vmatpush.bf16.msra.mxu1 %v2881_v63  ;;  %v2686_v43 = vld [vmem:[#allocation5 + $0x230] sm:$0xf0]  ;;  %v3089_v48 = vor.u32 %v3686_v38, %v3086_v39  ;;  %v3682_v49 = vld [vmem:[#allocation5 + $0x524] sm:$0xf]  ;;  %v2772_v33 = vld [vmem:[#allocation5 + $0x2c8] sm:$0xf] }
  0x66   :  { %1471 = vmatpush.bf16.msra.mxu3 %v3009_v3  ;;  %v2814_v45 = vld [vmem:[#allocation5 + $0x330] sm:$0xf0]  ;;  %v2689_v52 = vor.u32 %v3586_v40, %v2686_v43  ;;  %v3582_v56 = vld [vmem:[#allocation5 + $0x204] sm:$0xf]  ;;  %v2884_v39 = vld [vmem:[#allocation5 + $0x3a8] sm:$0xf]  ;;  %v2501_v40 = vor.u32 %v3541_v32, %v2500_v29 }
  0x67   :  { %1484 = vmatpush.bf16.msrb.mxu2 %v3153_v61  ;;  %v2942_v47 = vld [vmem:[#allocation5 + $0x430] sm:$0xf0]  ;;  %v2817_v53 = vor.u32 %v3618_v44, %v2814_v45  ;;  %v3614_v58 = vld [vmem:[#allocation5 + $0x304] sm:$0xf]  ;;  %v2484_v43 = vld [vmem:[#allocation5 + $0x88] sm:$0xf] }
  0x68   :  { %1444 = vmatpush.bf16.msra.mxu0 %v2737_v11  ;;  %v3070_v51 = vld [vmem:[#allocation5 + $0x530] sm:$0xf0]  ;;  %v2945_v59 = vor.u32 %v3650_v46, %v2942_v47  ;;  %v3646_v62 = vld [vmem:[#allocation5 + $0x404] sm:$0xf]  ;;  %v3537_v46 = vld [vmem:[#allocation5 + $0x94] sm:$0xf0] }
  0x69   :  { %1458 = vmatpush.bf16.msra.mxu1 %v2865_v12  ;;  %v2670_v57 = vld [vmem:[#allocation5 + $0x210] sm:$0xf0]  ;;  %v3073_v3 = vor.u32 %v3682_v49, %v3070_v51  ;;  %v3710_v5 = vld [vmem:[#allocation5 + $0x604] sm:$0xf]  ;;  %v2756_v47 = vld [vmem:[#allocation5 + $0x2a8] sm:$0xf] }
  0x6a   :  { %1472 = vmatpush.bf16.msra.mxu3 %v2993_v16  ;;  %v2798_v61 = vld [vmem:[#allocation5 + $0x310] sm:$0xf0]  ;;  %v2673_v7 = vor.u32 %v3582_v56, %v2670_v57  ;;  %v2516_v16 = vld [vmem:[#allocation5 + $0xc8] sm:$0xf]  ;;  %v3569_v51 = vld [vmem:[#allocation5 + $0x194] sm:$0xf0] }
  0x6b   :  { %1485 = vmatpush.bf16.msrb.mxu2 %v3137_v10  ;;  %v2926_v63 = vld [vmem:[#allocation5 + $0x410] sm:$0xf0]  ;;  %v2801_v9 = vor.u32 %v3614_v58, %v2798_v61  ;;  %v3678_v10 = vld [vmem:[#allocation5 + $0x504] sm:$0xf]  ;;  %v2517_v26 = vor.u32 %v3545_v18, %v2516_v16  ;;  %v2612_v49 = vld [vmem:[#allocation5 + $0x188] sm:$0xf] }
  0x6c   :  { %1445 = vmatpush.bf16.msra.mxu0 %v2721_v23  ;;  %v3182_v6 = vld [vmem:[#allocation5 + $0x610] sm:$0xf0]  ;;  %v2929_v12 = vor.u32 %v3646_v62, %v2926_v63  ;;  %v2644_v23 = vld [vmem:[#allocation5 + $0x1c8] sm:$0xf]  ;;  %v3633_v57 = vld [vmem:[#allocation5 + $0x394] sm:$0xf0]  ;;  %v2613_v61 = vor.u32 %v3569_v51, %v2612_v49 }
  0x6d   :  { %1459 = vmatpush.bf16.msra.mxu1 %v2849_v24  ;;  %v3054_v11 = vld [vmem:[#allocation5 + $0x510] sm:$0xf0]  ;;  %v3185_v19 = vor.u32 %v3710_v5, %v3182_v6  ;;  %v3577_v24 = vld [vmem:[#allocation5 + $0x1d4] sm:$0xf0]  ;;  %v2868_v56 = vld [vmem:[#allocation5 + $0x388] sm:$0xf] }
  0x6e   :  { %1473 = vmatpush.bf16.msra.mxu3 %v2977_v28  ;;  %v3641_v28 = vld [vmem:[#allocation5 + $0x3d4] sm:$0xf0]  ;;  %v2645_v31 = vor.u32 %v3577_v24, %v2644_v23  ;;  %v2468_v58 = vld [vmem:[#allocation5 + $0x68] sm:$0xf] }
  0x6f   :  { %1486 = vmatpush.bf16.msrb.mxu2 %v3121_v22  ;;  %v3057_v22 = vor.u32 %v3678_v10, %v3054_v11  ;;  %v2901_v38 = vor.u32 %v3641_v28, %v2900_v27  ;;  %v3533_v62 = vld [vmem:[#allocation5 + $0x74] sm:$0xf0]  ;;  %v2740_v63 = vld [vmem:[#allocation5 + $0x288] sm:$0xf] }
  0x70   :  { %1446 = vmatpush.bf16.msra.mxu0 %v2705_v35  ;;  %v2628_v35 = vld [vmem:[#allocation5 + $0x1a8] sm:$0xf]  ;;  %v3601_v0 = vld [vmem:[#allocation5 + $0x294] sm:$0xf0]  ;;  %v2469_v4 = vor.u32 %v3533_v62, %v2468_v58 }
  0x71   :  { %1460 = vmatpush.bf16.msra.mxu1 %v2833_v36  ;;  %v3573_v36 = vld [vmem:[#allocation5 + $0x1b4] sm:$0xf0]  ;;  %v2596_v1 = vld [vmem:[#allocation5 + $0x168] sm:$0xf] }
  0x72   :  { %1474 = vmatpush.bf16.msra.mxu3 %v2961_v41  ;;  %v3637_v41 = vld [vmem:[#allocation5 + $0x3b4] sm:$0xf0]  ;;  %v2629_v45 = vor.u32 %v3573_v36, %v2628_v35  ;;  %v2852_v5 = vld [vmem:[#allocation5 + $0x368] sm:$0xf] }
  0x73   :  { %1487 = vmatpush.bf16.msrb.mxu2 %v3105_v34  ;;  %v3609_v34 = vld [vmem:[#allocation5 + $0x2d4] sm:$0xf0]  ;;  %v2580_v14 = vld [vmem:[#allocation5 + $0x148] sm:$0xf] }
  0x74   :  { %1447 = vmatpush.bf16.msra.mxu0 %v2689_v52  ;;  %v2773_v44 = vor.u32 %v3609_v34, %v2772_v33  ;;  %v2885_v52 = vor.u32 %v3637_v41, %v2884_v39  ;;  %v3565_v2 = vld [vmem:[#allocation5 + $0x174] sm:$0xf0]  ;;  %v2836_v18 = vld [vmem:[#allocation5 + $0x348] sm:$0xf] }
  0x75   :  { %1461 = vmatpush.bf16.msra.mxu1 %v2817_v53  ;;  %v2485_v53 = vor.u32 %v3537_v46, %v2484_v43  ;;  %v3629_v6 = vld [vmem:[#allocation5 + $0x374] sm:$0xf0]  ;;  %v2597_v10 = vor.u32 %v3565_v2, %v2596_v1  ;;  %v2436_v20 = vld [vmem:[#allocation5 + $0x28] sm:$0xf] }
  0x76   :  { %1475 = vmatpush.bf16.msra.mxu3 %v2945_v59  ;;  %v3529_v11 = vld [vmem:[#allocation5 + $0x54] sm:$0xf0]  ;;  %v2853_v16 = vor.u32 %v3629_v6, %v2852_v5  ;;  %v2708_v24 = vld [vmem:[#allocation5 + $0x248] sm:$0xf] }
  0x77   :  { %1488 = vmatpush.bf16.msrb.mxu2 %v3089_v48  ;;  %v3605_v48 = vld [vmem:[#allocation5 + $0x2b4] sm:$0xf0]  ;;  %v2820_v29 = vld [vmem:[#allocation5 + $0x328] sm:$0xf] }
  0x78   :  { %1448 = vmatpush.bf16.msra.mxu0 %v2673_v7  ;;  %v2757_v59 = vor.u32 %v3605_v48, %v2756_v47  ;;  %v2452_v7 = vld [vmem:[#allocation5 + $0x48] sm:$0xf]  ;;  %v3561_v15 = vld [vmem:[#allocation5 + $0x154] sm:$0xf0] }
  0x79   :  { %1462 = vmatpush.bf16.msra.mxu1 %v2801_v9  ;;  %v2741_v9 = vor.u32 %v3601_v0, %v2740_v63  ;;  %v3525_v23 = vld [vmem:[#allocation5 + $0x34] sm:$0xf0]  ;;  %v2420_v32 = vld [vmem:[#allocation5 + $0x8] sm:$0xf] }
  0x7a   :  { %1476 = vmatpush.bf16.msra.mxu3 %v2929_v12  ;;  %v2724_v12 = vld [vmem:[#allocation5 + $0x268] sm:$0xf]  ;;  %v3557_v27 = vld [vmem:[#allocation5 + $0x134] sm:$0xf0] }
  0x7b   :  { %1489 = vmatpush.bf16.msrb.mxu2 %v3073_v3  ;;  %1449 = vmatmul.bf16.vlgmr.msra.gmra.mxu0 %v4033_v54  ;;  %v2869_v3 = vor.u32 %v3633_v57, %v2868_v56  ;;  %v3521_v33 = vld [vmem:[#allocation5 + $0x14] sm:$0xf0]  ;;  %v2548_v36 = vld [vmem:[#allocation5 + $0x108] sm:$0xf]  ;;  %v2534_v57 = vld [vmem:[#allocation5 + $0xf8] sm:$0xf0] }
  0x7c   :  { %1504 = vmatpush.bf16.msrb.mxu0 %v3185_v19  ;;  %1463 = vmatmul.bf16.vlgmr.msra.gmra.mxu1 %v4037_v60  ;;  %v3625_v19 = vld [vmem:[#allocation5 + $0x354] sm:$0xf0]  ;;  %v3044_v41 = vld [vmem:[#allocation5 + $0x4e8] sm:$0xf]  ;;  %v2421_v47 = vor.u32 %v3521_v33, %v2420_v32  ;;  %v3535_v33 = vld [vmem:[#allocation5 + $0x8c] sm:$0xf] }
  0x7d   :  { %1511 = vmatpush.bf16.msrb.mxu1 %v2533_v13  ;;  %1477 = vmatmul.bf16.vlgmr.msra.gmra.mxu3 %v4049_v37  ;;  %v3597_v13 = vld [vmem:[#allocation5 + $0x274] sm:$0xf0]  ;;  %v2837_v28 = vor.u32 %v3625_v19, %v2836_v18  ;;  %v2804_v48 = vld [vmem:[#allocation5 + $0x308] sm:$0xf] }
  0x7e   :  { %1525 = vmatpush.bf16.msrb.mxu3 %v2661_v17  ;;  %v2453_v17 = vor.u32 %v3529_v11, %v2452_v7  ;;  %v2725_v21 = vor.u32 %v3597_v13, %v2724_v12  ;;  %v3589_v39 = vld [vmem:[#allocation5 + $0x234] sm:$0xf0]  ;;  %v3028_v58 = vld [vmem:[#allocation5 + $0x4c8] sm:$0xf] }
  0x7f   :  { %1490 = vmatpush.bf16.msrb.mxu2 %v3057_v22  ;;  %v2581_v22 = vor.u32 %v3561_v15, %v2580_v14  ;;  %v3677_v43 = vld [vmem:[#allocation5 + $0x4f4] sm:$0xf0]  ;;  %v3156_v62 = vld [vmem:[#allocation5 + $0x5c8] sm:$0xf]  ;;  %v3579_v15 = vld [vmem:[#allocation5 + $0x1ec] sm:$0xf] }
  0x80   :  { %1539 = vmatpush.bf16.msra.mxu0 %v2789_v30  ;;  %v2437_v30 = vor.u32 %v3525_v23, %v2436_v20  ;;  %v3709_v46 = vld [vmem:[#allocation5 + $0x5f4] sm:$0xf0]  ;;  %v3045_v56 = vor.u32 %v3677_v43, %v3044_v41  ;;  %v2676_v63 = vld [vmem:[#allocation5 + $0x208] sm:$0xf]  ;;  %v2630_v41 = vld [vmem:[#allocation5 + $0x1b8] sm:$0xf0] }
  0x81   :  { %1512 = vmatpush.bf16.msrb.mxu1 %v2517_v26  ;;  %v2564_v26 = vld [vmem:[#allocation5 + $0x128] sm:$0xf]  ;;  %v3617_v49 = vld [vmem:[#allocation5 + $0x314] sm:$0xf0] }
  0x82   :  { %1526 = vmatpush.bf16.msrb.mxu3 %v2645_v31  ;;  %1491 = vmatmul.bf16.vlgmr.msrb.gmra.mxu2 %v4051_v42  ;;  %v3621_v31 = vld [vmem:[#allocation5 + $0x334] sm:$0xf0]  ;;  %v2565_v35 = vor.u32 %v3557_v27, %v2564_v26  ;;  %v2805_v1 = vor.u32 %v3617_v49, %v2804_v48  ;;  %v3012_v11 = vld [vmem:[#allocation5 + $0x4a8] sm:$0xf]  ;;  %v3575_v27 = vld [vmem:[#allocation5 + $0x1cc] sm:$0xf] }
  0x83   :  { %1553 = vmatpush.bf16.msra.mxu2 %v2917_v25  ;;  %v3593_v25 = vld [vmem:[#allocation5 + $0x254] sm:$0xf0]  ;;  %v3108_v43 = vld [vmem:[#allocation5 + $0x568] sm:$0xf]  ;;  %v2470_v48 = vld [vmem:[#allocation5 + $0x78] sm:$0xf0] }
  0x84   :  { %1540 = vmatpush.bf16.msra.mxu0 %v2773_v44  ;;  %v2709_v34 = vor.u32 %v3593_v25, %v2708_v24  ;;  %v2821_v44 = vor.u32 %v3621_v31, %v2820_v29  ;;  %v3585_v0 = vld [vmem:[#allocation5 + $0x214] sm:$0xf0]  ;;  %v2996_v24 = vld [vmem:[#allocation5 + $0x488] sm:$0xf] }
  0x85   :  { %1513 = vmatpush.bf16.msrb.mxu1 %v2501_v40  ;;  %v3553_v40 = vld [vmem:[#allocation5 + $0x114] sm:$0xf0]  ;;  %v2677_v7 = vor.u32 %v3585_v0, %v2676_v63  ;;  %v3124_v29 = vld [vmem:[#allocation5 + $0x588] sm:$0xf]  ;;  %v3527_v63 = vld [vmem:[#allocation5 + $0x4c] sm:$0xf] }
  0x86   :  { %1527 = vmatpush.bf16.msrb.mxu3 %v2629_v45  ;;  %v3172_v45 = vld [vmem:[#allocation5 + $0x5e8] sm:$0xf]  ;;  %v3705_v2 = vld [vmem:[#allocation5 + $0x5d4] sm:$0xf0]  ;;  %v2454_v0 = vld [vmem:[#allocation5 + $0x58] sm:$0xf0] }
  0x87   :  { %1554 = vmatpush.bf16.msra.mxu2 %v2901_v38  ;;  %v2692_v38 = vld [vmem:[#allocation5 + $0x228] sm:$0xf]  ;;  %v3157_v12 = vor.u32 %v3705_v2, %v3156_v62  ;;  %v3669_v13 = vld [vmem:[#allocation5 + $0x4b4] sm:$0xf0] }
  0x88   :  { %1541 = vmatpush.bf16.msra.mxu0 %v2757_v59  ;;  %v2693_v51 = vor.u32 %v3589_v39, %v2692_v38  ;;  %v3673_v59 = vld [vmem:[#allocation5 + $0x4d4] sm:$0xf0]  ;;  %v3013_v20 = vor.u32 %v3669_v13, %v3012_v11  ;;  %v2948_v2 = vld [vmem:[#allocation5 + $0x428] sm:$0xf]  ;;  %v3523_v11 = vld [vmem:[#allocation5 + $0x2c] sm:$0xf] }
  0x89   :  { %1514 = vmatpush.bf16.msrb.mxu1 %v2485_v53  ;;  %v2549_v53 = vor.u32 %v3553_v40, %v2548_v36  ;;  %v3029_v6 = vor.u32 %v3673_v59, %v3028_v58  ;;  %v3701_v18 = vld [vmem:[#allocation5 + $0x5b4] sm:$0xf0]  ;;  %v2980_v36 = vld [vmem:[#allocation5 + $0x468] sm:$0xf]  ;;  %v3571_v40 = vld [vmem:[#allocation5 + $0x1ac] sm:$0xf] }
  0x8a   :  { %1528 = vmatpush.bf16.msrb.mxu3 %v2613_v61  ;;  %v3173_v61 = vor.u32 %v3709_v46, %v3172_v45  ;;  %v3665_v26 = vld [vmem:[#allocation5 + $0x494] sm:$0xf0]  ;;  %v2633_v49 = vor.u32 %v3571_v40, %v2630_v41  ;;  %v3092_v58 = vld [vmem:[#allocation5 + $0x548] sm:$0xf]  ;;  %v2438_v13 = vld [vmem:[#allocation5 + $0x38] sm:$0xf0] }
  0x8b   :  { %1555 = vmatpush.bf16.msra.mxu2 %v2885_v52  ;;  %3195 = vmatmul.msk.bf16.vlgmr.msrb.gmra.mxu0 %vm1311_vm0, %v4045_v50  ;;  %v3547_v52 = vld [vmem:[#allocation5 + $0xec] sm:$0xf]  ;;  %v2997_v32 = vor.u32 %v3665_v26, %v2996_v24  ;;  %v3661_v39 = vld [vmem:[#allocation5 + $0x474] sm:$0xf0]  ;;  %v2441_v24 = vor.u32 %v3523_v11, %v2438_v13  ;;  %v2918_v26 = vld [vmem:[#allocation5 + $0x3f8] sm:$0xf0] }
  0x8c   :  { %1542 = vmatpush.bf16.msra.mxu0 %v2741_v9  ;;  %v2537_v5 = vor.u32 %v3547_v52, %v2534_v57  ;;  %v3543_v9 = vld [vmem:[#allocation5 + $0xcc] sm:$0xf]  ;;  %v2981_v46 = vor.u32 %v3661_v39, %v2980_v36  ;;  %v2614_v57 = vld [vmem:[#allocation5 + $0x198] sm:$0xf0]  ;;  %v3689_v59 = vld [vmem:[#allocation5 + $0x554] sm:$0xf0] }
  0x8d   :  { %1515 = vmatpush.bf16.msrb.mxu1 %v2469_v4  ;;  %v3713_v4 = vld [vmem:[#allocation5 + $0x614] sm:$0xf0]  ;;  %v3555_v39 = vld [vmem:[#allocation5 + $0x12c] sm:$0xf]  ;;  %v2566_v40 = vld [vmem:[#allocation5 + $0x138] sm:$0xf0] }
  0x8e   :  { %1529 = vmatpush.bf16.msrb.mxu3 %v2597_v10  ;;  %v2518_v10 = vld [vmem:[#allocation5 + $0xd8] sm:$0xf0]  ;;  %v3703_v11 = vld [vmem:[#allocation5 + $0x5cc] sm:$0xf] }
  0x8f   :  { %1556 = vmatpush.bf16.msra.mxu2 %v2869_v3  ;;  %v3188_v3 = vld [vmem:[#allocation5 + $0x608] sm:$0xf]  ;;  %v2521_v19 = vor.u32 %v3543_v9, %v2518_v10  ;;  %v3685_v9 = vld [vmem:[#allocation5 + $0x534] sm:$0xf0]  ;;  %v2457_v10 = vor.u32 %v3527_v63, %v2454_v0 }
  0x90   :  { %1543 = vmatpush.bf16.msra.mxu0 %v2725_v21  ;;  %v3189_v14 = vor.u32 %v3713_v4, %v3188_v3  ;;  %v3539_v21 = vld [vmem:[#allocation5 + $0xac] sm:$0xf]  ;;  %v3093_v3 = vor.u32 %v3689_v59, %v3092_v58  ;;  %v3653_v4 = vld [vmem:[#allocation5 + $0x434] sm:$0xf0]  ;;  %v2550_v58 = vld [vmem:[#allocation5 + $0x118] sm:$0xf0] }
  0x91   :  { %1516 = vmatpush.bf16.msrb.mxu1 %v2453_v17  ;;  %v3140_v17 = vld [vmem:[#allocation5 + $0x5a8] sm:$0xf]  ;;  %v2886_v59 = vld [vmem:[#allocation5 + $0x3b8] sm:$0xf0] }
  0x92   :  { %1530 = vmatpush.bf16.msrb.mxu3 %v2581_v22  ;;  %v2502_v22 = vld [vmem:[#allocation5 + $0xb8] sm:$0xf0]  ;;  %v3141_v25 = vor.u32 %v3701_v18, %v3140_v17  ;;  %v3060_v18 = vld [vmem:[#allocation5 + $0x508] sm:$0xf] }
  0x93   :  { %1557 = vmatpush.bf16.msra.mxu2 %v2853_v16  ;;  %v2662_v16 = vld [vmem:[#allocation5 + $0x1f8] sm:$0xf0]  ;;  %v2505_v31 = vor.u32 %v3539_v21, %v2502_v22  ;;  %v3681_v21 = vld [vmem:[#allocation5 + $0x514] sm:$0xf0]  ;;  %v3611_v22 = vld [vmem:[#allocation5 + $0x2ec] sm:$0xf] }
  0x94   :  { %1544 = vmatpush.bf16.msra.mxu0 %v2709_v34  ;;  %v2665_v23 = vor.u32 %v3579_v15, %v2662_v16  ;;  %v2486_v34 = vld [vmem:[#allocation5 + $0x98] sm:$0xf0]  ;;  %v2932_v15 = vld [vmem:[#allocation5 + $0x408] sm:$0xf]  ;;  %v3649_v16 = vld [vmem:[#allocation5 + $0x414] sm:$0xf0] }
  0x95   :  { %1517 = vmatpush.bf16.msrb.mxu1 %v2437_v30  ;;  %v3697_v30 = vld [vmem:[#allocation5 + $0x594] sm:$0xf0]  ;;  %v2489_v45 = vor.u32 %v3535_v33, %v2486_v34  ;;  %v3675_v33 = vld [vmem:[#allocation5 + $0x4ec] sm:$0xf]  ;;  %v3046_v34 = vld [vmem:[#allocation5 + $0x4f8] sm:$0xf0] }
  0x96   :  { %1531 = vmatpush.bf16.msrb.mxu3 %v2565_v35  ;;  %v3125_v38 = vor.u32 %v3697_v30, %v3124_v29  ;;  %v2422_v29 = vld [vmem:[#allocation5 + $0x18] sm:$0xf0] }
  0x97   :  { %1558 = vmatpush.bf16.msra.mxu2 %v2837_v28  ;;  %v2646_v28 = vld [vmem:[#allocation5 + $0x1d8] sm:$0xf0] }
  0x98   :  { %1545 = vmatpush.bf16.msra.mxu0 %v2693_v51  ;;  %v2649_v35 = vor.u32 %v3575_v27, %v2646_v28  ;;  %v2964_v51 = vld [vmem:[#allocation5 + $0x448] sm:$0xf]  ;;  %v2933_v27 = vor.u32 %v3649_v16, %v2932_v15  ;;  %v3519_v28 = vld [vmem:[#allocation5 + $0xc] sm:$0xf]  ;;  %v2998_v16 = vld [vmem:[#allocation5 + $0x498] sm:$0xf0] }
  0x99   :  { %1518 = vmatpush.bf16.msrb.mxu1 %v2421_v47  ;;  %v3531_v47 = vld [vmem:[#allocation5 + $0x6c] sm:$0xf]  ;;  %v2425_v41 = vor.u32 %v3519_v28, %v2422_v29 }
  0x9a   :  { %1532 = vmatpush.bf16.msrb.mxu3 %v2549_v53  ;;  %v3657_v53 = vld [vmem:[#allocation5 + $0x454] sm:$0xf0]  ;;  %v3663_v15 = vld [vmem:[#allocation5 + $0x48c] sm:$0xf] }
  0x9b   :  { %1559 = vmatpush.bf16.msra.mxu2 %v2821_v44  ;;  %v3693_v44 = vld [vmem:[#allocation5 + $0x574] sm:$0xf0]  ;;  %v2965_v62 = vor.u32 %v3657_v53, %v2964_v51  ;;  %v3603_v51 = vld [vmem:[#allocation5 + $0x2ac] sm:$0xf] }
  0x9c   :  { %1519 = vmatmul.bf16.vlgmr.msrb.gmra.mxu1 %v4035_v55  ;;  %1546 = vmatpush.bf16.msra.mxu0 %v2677_v7  ;;  %v3109_v52 = vor.u32 %v3693_v44, %v3108_v43  ;;  %v3076_v7 = vld [vmem:[#allocation5 + $0x528] sm:$0xf]  ;;  %v3639_v43 = vld [vmem:[#allocation5 + $0x3cc] sm:$0xf]  ;;  %v2902_v44 = vld [vmem:[#allocation5 + $0x3d8] sm:$0xf0] }
  0x9d   :  { %1567 = vmatpush.bf16.msra.mxu1 %v3045_v56  ;;  %1533 = vmatmul.bf16.vlgmr.msrb.gmra.mxu3 %v4041_v8  ;;  %v3567_v56 = vld [vmem:[#allocation5 + $0x18c] sm:$0xf]  ;;  %v3077_v17 = vor.u32 %v3685_v9, %v3076_v7  ;;  %v2905_v53 = vor.u32 %v3639_v43, %v2902_v44  ;;  %v2742_v7 = vld [vmem:[#allocation5 + $0x298] sm:$0xf0] }
  0x9e   :  { %1581 = vmatpush.bf16.msra.mxu3 %v3173_v61  ;;  %v2473_v61 = vor.u32 %v3531_v47, %v2470_v48  ;;  %v2569_v48 = vor.u32 %v3555_v39, %v2566_v40  ;;  %v3631_v9 = vld [vmem:[#allocation5 + $0x38c] sm:$0xf]  ;;  %v2694_v44 = vld [vmem:[#allocation5 + $0x238] sm:$0xf0] }
  0x9f   :  { %1560 = vmatpush.bf16.msra.mxu2 %v2805_v1  ;;  %1547 = vmatmul.bf16.vlgmr.msra.gmra.mxu0 %v4033_v54  ;;  %v2617_v1 = vor.u32 %v3567_v56, %v2614_v57  ;;  %v3635_v56 = vld [vmem:[#allocation5 + $0x3ac] sm:$0xf] }
  0xa0   :  { %1602 = vmatpush.bf16.msrb.mxu0 %v3189_v14  ;;  %v3551_v57 = vld [vmem:[#allocation5 + $0x10c] sm:$0xf] }
  0xa1   :  { %1568 = vmatpush.bf16.msra.mxu1 %v3029_v6  ;;  %v2598_v6 = vld [vmem:[#allocation5 + $0x178] sm:$0xf0]  ;;  %v3655_v39 = vld [vmem:[#allocation5 + $0x44c] sm:$0xf] }
  0xa2   :  { %1582 = vmatpush.bf16.msra.mxu3 %v3157_v12  ;;  %1561 = vmatmul.bf16.vlgmr.msra.gmra.mxu2 %v4037_v60  ;;  %v2949_v12 = vor.u32 %v3653_v4, %v2948_v2  ;;  %v3667_v2 = vld [vmem:[#allocation5 + $0x4ac] sm:$0xf]  ;;  %v2889_v4 = vor.u32 %v3635_v56, %v2886_v59  ;;  %v2950_v56 = vld [vmem:[#allocation5 + $0x438] sm:$0xf0] }
  0xa3   :  { %1609 = vmatpush.bf16.msrb.mxu2 %v2537_v5  ;;  %v3563_v5 = vld [vmem:[#allocation5 + $0x16c] sm:$0xf] }
  0xa4   :  { %1623 = vmatpush.bf16.msra.mxu0 %v2665_v23  ;;  %v2601_v14 = vor.u32 %v3563_v5, %v2598_v6  ;;  %v2790_v23 = vld [vmem:[#allocation5 + $0x2f8] sm:$0xf0]  ;;  %v3599_v6 = vld [vmem:[#allocation5 + $0x28c] sm:$0xf] }
  0xa5   :  { %1569 = vmatpush.bf16.msra.mxu1 %v3013_v20  ;;  %v2582_v20 = vld [vmem:[#allocation5 + $0x158] sm:$0xf0]  ;;  %v3587_v43 = vld [vmem:[#allocation5 + $0x22c] sm:$0xf] }
  0xa6   :  { %1583 = vmatpush.bf16.msra.mxu3 %v3141_v25  ;;  %v3643_v25 = vld [vmem:[#allocation5 + $0x3ec] sm:$0xf] }
  0xa7   :  { %1610 = vmatpush.bf16.msrb.mxu2 %v2521_v19  ;;  %v3559_v19 = vld [vmem:[#allocation5 + $0x14c] sm:$0xf]  ;;  %v2921_v36 = vor.u32 %v3643_v25, %v2918_v26 }
  0xa8   :  { %1624 = vmatpush.bf16.msra.mxu0 %v2649_v35  ;;  %v2585_v30 = vor.u32 %v3559_v19, %v2582_v20  ;;  %v3607_v35 = vld [vmem:[#allocation5 + $0x2cc] sm:$0xf] }
  0xa9   :  { %1570 = vmatpush.bf16.msra.mxu1 %v2997_v32  ;;  %v2793_v32 = vor.u32 %v3611_v22, %v2790_v23  ;;  %v3595_v19 = vld [vmem:[#allocation5 + $0x26c] sm:$0xf]  ;;  %v3142_v23 = vld [vmem:[#allocation5 + $0x5b8] sm:$0xf0] }
  0xaa   :  { %1584 = vmatpush.bf16.msra.mxu3 %v3125_v38  ;;  %v2774_v38 = vld [vmem:[#allocation5 + $0x2d8] sm:$0xf0]  ;;  %v3627_v20 = vld [vmem:[#allocation5 + $0x36c] sm:$0xf] }
  0xab   :  { %1611 = vmatpush.bf16.msrb.mxu2 %v2505_v31  ;;  %v3061_v31 = vor.u32 %v3681_v21, %v3060_v18  ;;  %v2777_v47 = vor.u32 %v3607_v35, %v2774_v38  ;;  %v2854_v21 = vld [vmem:[#allocation5 + $0x378] sm:$0xf0]  ;;  %v3699_v22 = vld [vmem:[#allocation5 + $0x5ac] sm:$0xf] }
  0xac   :  { %1625 = vmatpush.bf16.msra.mxu0 %v2633_v49  ;;  %v3030_v49 = vld [vmem:[#allocation5 + $0x4d8] sm:$0xf0]  ;;  %v3659_v26 = vld [vmem:[#allocation5 + $0x46c] sm:$0xf]  ;;  %v2857_v28 = vor.u32 %v3627_v20, %v2854_v21  ;;  %v3145_v29 = vor.u32 %v3699_v22, %v3142_v23  ;;  %v3248_v23 = vld [vmem:[#allocation8 + $0x60] sm:$0xf] }
  0xad   :  { %1571 = vmatpush.bf16.msra.mxu1 %v2981_v46  ;;  %v3671_v46 = vld [vmem:[#allocation5 + $0x4cc] sm:$0xf]  ;;  %v3126_v35 = vld [vmem:[#allocation5 + $0x598] sm:$0xf0] }
  0xae   :  { %1585 = vmatpush.bf16.msra.mxu3 %v3109_v52  ;;  %v2758_v52 = vld [vmem:[#allocation5 + $0x2b8] sm:$0xf0]  ;;  %v3033_v63 = vor.u32 %v3671_v46, %v3030_v49 }
  0xaf   :  { %1612 = vmatpush.bf16.msrb.mxu2 %v2489_v45  ;;  %3196 = vmatmul.msk.bf16.vlgmr.msrb.gmra.mxu0 %vm1311_vm0, %v4045_v50  ;;  %v3049_v45 = vor.u32 %v3675_v33, %v3046_v34  ;;  %v2761_v0 = vor.u32 %v3603_v51, %v2758_v52  ;;  %v2838_v33 = vld [vmem:[#allocation5 + $0x358] sm:$0xf0]  ;;  %v3695_v34 = vld [vmem:[#allocation5 + $0x58c] sm:$0xf]  ;;  %v4073_v51 = vld [vmem:[#allocation7] sm:$0xf]  ;;  %v2697_v52 = vor.u32 %v3587_v43, %v2694_v44 }
  0xb0   :  { %1626 = vmatpush.bf16.msra.mxu0 %v2617_v1  ;;  %v2553_v1 = vor.u32 %v3551_v57, %v2550_v58  ;;  %v2822_v46 = vld [vmem:[#allocation5 + $0x338] sm:$0xf0]  ;;  %v3583_v57 = vld [vmem:[#allocation5 + $0x20c] sm:$0xf] }
  0xb1   :  { %1572 = vmatpush.bf16.msra.mxu1 %v2965_v62  ;;  %v3174_v62 = vld [vmem:[#allocation5 + $0x5f8] sm:$0xf0] }
  0xb2   :  { %1586 = vmatpush.bf16.msra.mxu3 %v3093_v3  ;;  %v3014_v3 = vld [vmem:[#allocation5 + $0x4b8] sm:$0xf0] }
  0xb3   :  { %1613 = vmatpush.bf16.msrb.mxu2 %v2473_v61  ;;  %v3707_v61 = vld [vmem:[#allocation5 + $0x5ec] sm:$0xf]  ;;  %v3017_v13 = vor.u32 %v3667_v2, %v3014_v3  ;;  %v3256_v2 = vld [vmem:[#allocation8 + $0x70] sm:$0xf]  ;;  %v3078_v20 = vld [vmem:[#allocation5 + $0x538] sm:$0xf0] }
  0xb4   :  { %1627 = vmatpush.bf16.msra.mxu0 %v2601_v14  ;;  %v3177_v5 = vor.u32 %v3707_v61, %v3174_v62  ;;  %v2745_v14 = vor.u32 %v3599_v6, %v2742_v7  ;;  %v2678_v62 = vld [vmem:[#allocation5 + $0x218] sm:$0xf0]  ;;  %v3687_v3 = vld [vmem:[#allocation5 + $0x54c] sm:$0xf] }
  0xb5   :  { %1573 = vmatpush.bf16.msra.mxu1 %v2949_v12  ;;  %v3158_v12 = vld [vmem:[#allocation5 + $0x5d8] sm:$0xf0] }
  0xb6   :  { %1587 = vmatpush.bf16.msra.mxu3 %v3077_v17  ;;  %v3161_v18 = vor.u32 %v3703_v11, %v3158_v12  ;;  %v3729_v7 = vld [vmem:[#allocation8 + $0x74] sm:$0xf0]  ;;  %v2681_v11 = vor.u32 %v3583_v57, %v2678_v62  ;;  %v3647_v12 = vld [vmem:[#allocation5 + $0x40c] sm:$0xf] }
  0xb7   :  { %1614 = vmatpush.bf16.msrb.mxu2 %v2457_v10  ;;  %v2870_v10 = vld [vmem:[#allocation5 + $0x398] sm:$0xf0] }
  0xb8   :  { %1628 = vmatpush.bf16.msra.mxu0 %v2585_v30  ;;  %v2873_v17 = vor.u32 %v3631_v9, %v2870_v10  ;;  %v3591_v30 = vld [vmem:[#allocation5 + $0x24c] sm:$0xf]  ;;  %v3320_v9 = vld [vmem:[#allocation8 + $0xf0] sm:$0xf]  ;;  %v3745_v10 = vld [vmem:[#allocation8 + $0xf4] sm:$0xf0] }
  0xb9   :  { %1574 = vmatpush.bf16.msra.mxu1 %v2933_v27  ;;  %v2982_v27 = vld [vmem:[#allocation5 + $0x478] sm:$0xf0]  ;;  %v3321_v21 = vor.u32 %v3745_v10, %v3320_v9  ;;  %v3280_v10 = vld [vmem:[#allocation8 + $0xa0] sm:$0xf] }
  0xba   :  { %1588 = vmatpush.bf16.msra.mxu3 %v3061_v31  ;;  %v2710_v31 = vld [vmem:[#allocation5 + $0x258] sm:$0xf0] }
  0xbb   :  { %1615 = vmatpush.bf16.msrb.mxu2 %v2441_v24  ;;  %v3001_v24 = vor.u32 %v3663_v15, %v2998_v16  ;;  %v2713_v38 = vor.u32 %v3591_v30, %v2710_v31  ;;  %v1324_v58 = vpop.f32.mrf.mxu0  ;;  %v3679_v31 = vld [vmem:[#allocation5 + $0x50c] sm:$0xf] }
  0xbc   :  { %1575 = vmatmul.bf16.vlgmr.msra.gmra.mxu1 %v4049_v37  ;;  %1629 = vmatpush.bf16.msra.mxu0 %v2569_v48  ;;  %v3110_v48 = vld [vmem:[#allocation5 + $0x578] sm:$0xf0] }
  0xbd   :  { %1637 = vmatpush.bf16.msrb.mxu1 %v2793_v32  ;;  %1589 = vmatmul.bf16.vlgmr.msra.gmra.mxu3 %v4051_v42  ;;  %v3623_v32 = vld [vmem:[#allocation5 + $0x34c] sm:$0xf] }
  0xbe   :  { %1651 = vmatpush.bf16.msrb.mxu3 %v2921_v36  ;;  %v2985_v36 = vor.u32 %v3659_v26, %v2982_v27  ;;  %v2841_v40 = vor.u32 %v3623_v32, %v2838_v33  ;;  %v3312_v26 = vld [vmem:[#allocation8 + $0xe0] sm:$0xf]  ;;  %v3743_v27 = vld [vmem:[#allocation8 + $0xe4] sm:$0xf0]  ;;  %v3062_v32 = vld [vmem:[#allocation5 + $0x518] sm:$0xf0] }
  0xbf   :  { %1616 = vmatpush.bf16.msrb.mxu2 %v2425_v41  ;;  %v3129_v41 = vor.u32 %v3695_v34, %v3126_v35  ;;  %v3240_v34 = vld [vmem:[#allocation8 + $0x50] sm:$0xf]  ;;  %v3725_v35 = vld [vmem:[#allocation8 + $0x54] sm:$0xf0]  ;;  %v3065_v44 = vor.u32 %v3679_v31, %v3062_v32  ;;  %v3264_v31 = vld [vmem:[#allocation8 + $0x80] sm:$0xf] }
  0xc0   :  { %1630 = vmatpush.bf16.msra.mxu0 %v2553_v1  ;;  %v1338_v1 = vpop.f32.mrf.mxu1  ;;  %v3731_v32 = vld [vmem:[#allocation8 + $0x84] sm:$0xf0] }
  0xc1   :  { %1638 = vmatpush.bf16.msrb.mxu1 %v2777_v47  ;;  %v3691_v47 = vld [vmem:[#allocation5 + $0x56c] sm:$0xf] }
  0xc2   :  { %1652 = vmatpush.bf16.msrb.mxu3 %v2905_v53  ;;  %1617 = vmatmul.bf16.vlgmr.msrb.gmra.mxu2 %v4035_v55  ;;  %v2726_v55 = vld [vmem:[#allocation5 + $0x278] sm:$0xf0]  ;;  %v3651_v53 = vld [vmem:[#allocation5 + $0x42c] sm:$0xf]  ;;  %v3113_v61 = vor.u32 %v3691_v47, %v3110_v48 }
  0xc3   :  { %1665 = vmatpush.bf16.msra.mxu2 %v3049_v45  ;;  %1631 = vmatmul.bf16.vlgmr.msra.gmra.mxu0 %v4041_v8  ;;  %v2729_v25 = vor.u32 %v3595_v19, %v2726_v55  ;;  %v2966_v8 = vld [vmem:[#allocation5 + $0x458] sm:$0xf0]  ;;  %v3619_v45 = vld [vmem:[#allocation5 + $0x32c] sm:$0xf]  ;;  %v2953_v6 = vor.u32 %v3651_v53, %v2950_v56  ;;  %v3257_v19 = vor.u32 %v3729_v7, %v3256_v2  ;;  %v1326_v33 = vpop.f32.mrf.mxu0 }
  0xc4   :  { %1679 = vmatpush.bf16.msrb.mxu0 %v3177_v5  ;;  %v2969_v49 = vor.u32 %v3655_v39, %v2966_v8  ;;  %v2825_v59 = vor.u32 %v3619_v45, %v2822_v46  ;;  %v4075_v5 = vpop.f32.mrf.mxu2  ;;  %v3683_v55 = vld [vmem:[#allocation5 + $0x52c] sm:$0xf]  ;;  %v3304_v39 = vld [vmem:[#allocation8 + $0xd0] sm:$0xf]  ;;  %v3741_v8 = vld [vmem:[#allocation8 + $0xd4] sm:$0xf0] }
  0xc5   :  { %1639 = vmatpush.bf16.msrb.mxu1 %v2761_v0  ;;  %v2806_v0 = vld [vmem:[#allocation5 + $0x318] sm:$0xf0]  ;;  %v3232_v46 = vld [vmem:[#allocation8 + $0x40] sm:$0xf]  ;;  %v3723_v47 = vld [vmem:[#allocation8 + $0x44] sm:$0xf0]  ;;  %v3305_v48 = vor.u32 %v3741_v8, %v3304_v39 }
  0xc6   :  { %1653 = vmatpush.bf16.msrb.mxu3 %v2889_v4  ;;  %v3094_v4 = vld [vmem:[#allocation5 + $0x558] sm:$0xf0]  ;;  %v3233_v56 = vor.u32 %v3723_v47, %v3232_v46  ;;  %v3719_v7 = vld [vmem:[#allocation8 + $0x24] sm:$0xf0] }
  0xc7   :  { %1666 = vmatpush.bf16.msra.mxu2 %v3033_v63  ;;  %v3615_v63 = vld [vmem:[#allocation5 + $0x30c] sm:$0xf]  ;;  %v3097_v16 = vor.u32 %v3687_v3, %v3094_v4 }
  0xc8   :  { %1680 = vmatpush.bf16.msrb.mxu0 %v3161_v18  ;;  %v2809_v15 = vor.u32 %v3615_v63, %v2806_v0  ;;  %v3190_v18 = vld [vmem:[#allocation5 + $0x618] sm:$0xf0] }
  0xc9   :  { %1640 = vmatpush.bf16.msrb.mxu1 %v2745_v14  ;;  %v323_v14 = vperm.slane %v4073_v51, 0  ;;  %v3737_v63 = vld [vmem:[#allocation8 + $0xb4] sm:$0xf0] }
  0xca   :  { %1654 = vmatpush.bf16.msrb.mxu3 %v2873_v17  ;;  %v3711_v17 = vld [vmem:[#allocation5 + $0x60c] sm:$0xf] }
  0xcb   :  { %1667 = vmatpush.bf16.msra.mxu2 %v3017_v13  ;;  %v2934_v13 = vld [vmem:[#allocation5 + $0x418] sm:$0xf0]  ;;  %v1327_v45 = vadd.f32 %v1326_v33, %v323_v14  ;;  %v3744_v33 = vld [vmem:[#allocation8 + $0xf4] sm:$0xf] }
  0xcc   :  { %1681 = vmatpush.bf16.msrb.mxu0 %v3145_v29  ;;  %v2937_v22 = vor.u32 %v3647_v12, %v2934_v13  ;;  %v3081_v29 = vor.u32 %v3683_v55, %v3078_v20  ;;  %v1354_v43 = vpop.f32.mrf.mxu2  ;;  %v3272_v55 = vld [vmem:[#allocation8 + $0x90] sm:$0xf]  ;;  %v3733_v20 = vld [vmem:[#allocation8 + $0x94] sm:$0xf0] }
  0xcd   :  { %1641 = vmatpush.bf16.msrb.mxu1 %v2729_v25  ;;  %v3193_v25 = vor.u32 %v3711_v17, %v3190_v18 }
  0xce   :  { %1655 = vmatpush.bf16.msrb.mxu3 %v2857_v28  ;;  %v1325_v28 = vadd.f32 %v1324_v58, %v323_v14  ;;  %v3224_v58 = vld [vmem:[#allocation8 + $0x30] sm:$0xf] }
  0xcf   :  { %1668 = vmatpush.bf16.msra.mxu2 %v3001_v24  ;;  %v3727_v24 = vld [vmem:[#allocation8 + $0x64] sm:$0xf0] }
  0xd0   :  { %1682 = vmatpush.bf16.msrb.mxu0 %v3129_v41  ;;  %v3249_v30 = vor.u32 %v3727_v24, %v3248_v23  ;;  %v1366_v41 = vpop.f32.mrf.mxu3 }
  0xd1   :  { %1642 = vmatpush.bf16.msrb.mxu1 %v2713_v38  ;;  %v1340_v38 = vpop.f32.mrf.mxu1 }
  0xd2   :  { %1656 = vmatpush.bf16.msrb.mxu3 %v2841_v40  ;;  %v1339_v40 = vadd.f32 %v1338_v1, %v1325_v28  ;;  %v1341_v53 = vadd.f32 %v1340_v38, %v1327_v45  ;;  %v3273_v28 = vor.u32 %v3733_v20, %v3272_v55  ;;  %v3742_v45 = vld [vmem:[#allocation8 + $0xe4] sm:$0xf]  ;;  %v3282_v55 = vld [vmem:[#allocation8 + $0xa8] sm:$0xf0]  ;;  %v3376_v20 = vld [vmem:[#allocation8 + $0x160] sm:$0xf] }
  0xd3   :  { %1669 = vmatpush.bf16.msra.mxu2 %v2985_v36  ;;  %v3313_v36 = vor.u32 %v3743_v27, %v3312_v26  ;;  %v3715_v26 = vld [vmem:[#allocation8 + $0x4] sm:$0xf0]  ;;  %v3728_v27 = vld [vmem:[#allocation8 + $0x74] sm:$0xf] }
  0xd4   :  { %1683 = vmatpush.bf16.msrb.mxu0 %v3113_v61  ;;  %v1408_v1 = vpop.f32.mrf.mxu2  ;;  %v1355_v2 = vadd.f32 %v1354_v43, %v1341_v53  ;;  %v3306_v53 = vld [vmem:[#allocation8 + $0xd8] sm:$0xf0] }
  0xd5   :  { %1643 = vmatpush.bf16.msrb.mxu1 %v2697_v52  ;;  %v3739_v52 = vld [vmem:[#allocation8 + $0xc4] sm:$0xf0] }
  0xd6   :  { %1657 = vmatpush.bf16.msrb.mxu3 %v2825_v59  ;;  %v3721_v59 = vld [vmem:[#allocation8 + $0x34] sm:$0xf0] }
  0xd7   :  { %1670 = vmatpush.bf16.msra.mxu2 %v2969_v49  ;;  %v3296_v49 = vld [vmem:[#allocation8 + $0xc0] sm:$0xf]  ;;  %v3225_v3 = vor.u32 %v3721_v59, %v3224_v58  ;;  %v3722_v58 = vld [vmem:[#allocation8 + $0x44] sm:$0xf]  ;;  %v3234_v59 = vld [vmem:[#allocation8 + $0x48] sm:$0xf0] }
  0xd8   :  { %1684 = vmatpush.bf16.msrb.mxu0 %v3097_v16  ;;  %v1380_v57 = vpop.f32.mrf.mxu0  ;;  %v3297_v61 = vor.u32 %v3739_v52, %v3296_v49  ;;  %v1368_v4 = vpop.f32.mrf.mxu3  ;;  %v3717_v16 = vld [vmem:[#allocation8 + $0x14] sm:$0xf0]  ;;  %v3242_v49 = vld [vmem:[#allocation8 + $0x58] sm:$0xf0] }
  0xd9   :  { %1644 = vmatpush.bf16.msrb.mxu1 %v2681_v11  ;;  %v1394_v62 = vpop.f32.mrf.mxu1  ;;  %v3735_v11 = vld [vmem:[#allocation8 + $0xa4] sm:$0xf0]  ;;  %v1369_v12 = vadd.f32 %v1368_v4, %v1355_v2  ;;  %v3720_v2 = vld [vmem:[#allocation8 + $0x34] sm:$0xf] }
  0xda   :  { %1658 = vmatpush.bf16.msrb.mxu3 %v2809_v15  ;;  %v3208_v15 = vld [vmem:[#allocation8 + $0x10] sm:$0xf]  ;;  %v3281_v17 = vor.u32 %v3735_v11, %v3280_v10  ;;  %v3290_v10 = vld [vmem:[#allocation8 + $0xb8] sm:$0xf0]  ;;  %v3761_v11 = vld [vmem:[#allocation8 + $0x174] sm:$0xf0] }
  0xdb   :  { %1671 = vmatpush.bf16.msra.mxu2 %v2953_v6  ;;  %v3216_v6 = vld [vmem:[#allocation8 + $0x20] sm:$0xf] }
  0xdc   :  { %1645 = vmatmul.bf16.vlgmr.msrb.gmra.mxu1 %v4033_v54  ;;  %1685 = vmatpush.bf16.msrb.mxu0 %v3081_v29  ;;  %v3241_v54 = vor.u32 %v3725_v35, %v3240_v34  ;;  %v3217_v13 = vor.u32 %v3719_v7, %v3216_v6  ;;  %v1410_v24 = vpop.f32.mrf.mxu2  ;;  %v3322_v34 = vld [vmem:[#allocation8 + $0xf8] sm:$0xf0] }
  0xdd   :  { %2123 = vmatpush.bf16.msra.mxu1 %v3321_v21  ;;  %1659 = vmatmul.bf16.vlgmr.msrb.gmra.mxu3 %v4037_v60  ;;  %v1353_v60 = vadd.f32 %v4075_v5, %v1339_v40  ;;  %v3726_v40 = vld [vmem:[#allocation8 + $0x64] sm:$0xf]  ;;  %v3325_v43 = vor.u32 %v3744_v33, %v3322_v34  ;;  %v3368_v33 = vld [vmem:[#allocation8 + $0x150] sm:$0xf] }
  0xde   :  { %2109 = vmatpush.bf16.msra.mxu3 %v3257_v19 }
  0xdf   :  { %1672 = vmatpush.bf16.msra.mxu2 %v2937_v22  ;;  %v1367_v0 = vadd.f32 %v1366_v41, %v1353_v60  ;;  %v3209_v22 = vor.u32 %v3717_v16, %v3208_v15  ;;  %v3250_v41 = vld [vmem:[#allocation8 + $0x68] sm:$0xf0]  ;;  %v3740_v60 = vld [vmem:[#allocation8 + $0xd4] sm:$0xf]  ;;  %v3718_v16 = vld [vmem:[#allocation8 + $0x24] sm:$0xf] }
  0xe0   :  { %1686 = vmatpush.bf16.msrb.mxu0 %v3065_v44  ;;  %v1422_v8 = vpop.f32.mrf.mxu3  ;;  %v3253_v47 = vor.u32 %v3726_v40, %v3250_v41 }
  0xe1   :  { %2124 = vmatpush.bf16.msra.mxu1 %v3313_v36  ;;  %v1381_v5 = vadd.f32 %v1380_v57, %v1367_v0  ;;  %v1396_v19 = vpop.f32.mrf.mxu1  ;;  %v324_v57 = vperm.slane %v4073_v51, 1  ;;  %v3237_v0 = vor.u32 %v3722_v58, %v3234_v59  ;;  %v3352_v58 = vld [vmem:[#allocation8 + $0x130] sm:$0xf]  ;;  %v3753_v59 = vld [vmem:[#allocation8 + $0x134] sm:$0xf0] }
  0xe2   :  { %2110 = vmatpush.bf16.msra.mxu3 %v3249_v30  ;;  %1673 = vmatmul.bf16.vlgmr.msra.gmra.mxu2 %v4049_v37  ;;  %v3288_v37 = vld [vmem:[#allocation8 + $0xb0] sm:$0xf]  ;;  %v3258_v30 = vld [vmem:[#allocation8 + $0x78] sm:$0xf0] }
  0xe3   :  { %1700 = vmatpush.bf16.msrb.mxu2 %v3193_v25  ;;  %1687 = vmatmul.bf16.vlgmr.msrb.gmra.mxu0 %v4051_v42  ;;  %v3289_v9 = vor.u32 %v3737_v63, %v3288_v37  ;;  %v1395_v14 = vadd.f32 %v1394_v62, %v1381_v5  ;;  %v1382_v42 = vpop.f32.mrf.mxu0  ;;  %v3200_v25 = vld [vmem:[#allocation8] sm:$0xf]  ;;  %v3261_v39 = vor.u32 %v3728_v27, %v3258_v30  ;;  %v3738_v62 = vld [vmem:[#allocation8 + $0xc4] sm:$0xf]  ;;  %v3298_v37 = vld [vmem:[#allocation8 + $0xc8] sm:$0xf0] }
  0xe4   :  { %v1383_v18 = vadd.f32 %v1382_v42, %v1369_v12  ;;  %v3201_v36 = vor.u32 %v3715_v26, %v3200_v25  ;;  %v3301_v4 = vor.u32 %v3738_v62, %v3298_v37  ;;  %v3384_v5 = vld [vmem:[#allocation8 + $0x170] sm:$0xf]  ;;  %v3716_v26 = vld [vmem:[#allocation8 + $0x14] sm:$0xf]  ;;  %v3210_v27 = vld [vmem:[#allocation8 + $0x18] sm:$0xf0] }
  0xe5   :  { %2125 = vmatpush.bf16.msra.mxu1 %v3305_v48  ;;  %v1409_v23 = vadd.f32 %v1408_v1, %v1395_v14  ;;  %v1436_v46 = vpop.f32.mrf.mxu2  ;;  %v3724_v48 = vld [vmem:[#allocation8 + $0x54] sm:$0xf]  ;;  %v1423_v1 = vadd.f32 %v1422_v8, %v324_v57  ;;  %v3385_v12 = vor.u32 %v3761_v11, %v3384_v5  ;;  %v3202_v8 = vld [vmem:[#allocation8 + $0x8] sm:$0xf0]  ;;  %v3749_v11 = vld [vmem:[#allocation8 + $0x114] sm:$0xf0] }
  0xe6   :  { %2111 = vmatpush.bf16.msra.mxu3 %v3241_v54  ;;  %v1397_v21 = vadd.f32 %v1396_v19, %v1383_v18  ;;  %v3314_v54 = vld [vmem:[#allocation8 + $0xe8] sm:$0xf0]  ;;  %v3734_v19 = vld [vmem:[#allocation8 + $0xa4] sm:$0xf] }
  0xe7   :  { %v1707_v38 = vmax.f32 %v1409_v23, 0.0  ;;  %v3317_v52 = vor.u32 %v3742_v45, %v3314_v54  ;;  %v1437_v14 = vadd.f32 %v1436_v46, %v1423_v1  ;;  %2137 = vmatpush.bf16.msra.mxu2 %v3385_v12  ;;  %v3730_v45 = vld [vmem:[#allocation8 + $0x84] sm:$0xf]  ;;  %v3266_v54 = vld [vmem:[#allocation8 + $0x88] sm:$0xf0] }
  0xe8   :  { %v1411_v29 = vadd.f32 %v1410_v24, %v1397_v21  ;;  %v1424_v63 = vpop.f32.mrf.mxu3 }
  0xe9   :  { %2126 = vmatpush.bf16.msra.mxu1 %v3297_v61  ;;  %v3309_v61 = vor.u32 %v3740_v60, %v3306_v53  ;;  %v1425_v42 = vadd.f32 %v1424_v63, %v324_v57  ;;  %v3755_v60 = vld [vmem:[#allocation8 + $0x144] sm:$0xf0]  ;;  %v3344_v63 = vld [vmem:[#allocation8 + $0x120] sm:$0xf] }
  0xea   :  { %2112 = vmatpush.bf16.msra.mxu3 %v3233_v56  ;;  %v1711_v35 = vmax.f32 %v1411_v29, 0.0  ;;  %v3245_v56 = vor.u32 %v3724_v48, %v3242_v49  ;;  %v3269_v49 = vor.u32 %v3730_v45, %v3266_v54  ;;  %v3748_v54 = vld [vmem:[#allocation8 + $0x114] sm:$0xf] }
  0xec   :  { %v4085_v44 = vpack.c.bf16 %v1711_v35, %v1707_v38  ;;  %v3213_v35 = vor.u32 %v3716_v26, %v3210_v27 }
  0xed   :  { %2127 = vmatpush.bf16.msra.mxu1 %v3289_v9  ;;  %v1438_v7 = vpop.f32.mrf.mxu2  ;;  %v3736_v9 = vld [vmem:[#allocation8 + $0xb4] sm:$0xf] }
  0xee   :  { %2113 = vmatpush.bf16.msra.mxu3 %v3225_v3  ;;  %v3226_v3 = vld [vmem:[#allocation8 + $0x38] sm:$0xf0]  ;;  %v3293_v18 = vor.u32 %v3736_v9, %v3290_v10  ;;  %v1439_v24 = vadd.f32 %v1438_v7, %v1425_v42  ;;  %v3336_v10 = vld [vmem:[#allocation8 + $0x110] sm:$0xf]  ;;  %v3747_v42 = vld [vmem:[#allocation8 + $0x104] sm:$0xf0] }
  0xef   :  { %v3337_v12 = vor.u32 %v3749_v11, %v3336_v10 }
  0xf1   :  { %2128 = vmatpush.bf16.msra.mxu1 %v3281_v17  ;;  %v3218_v17 = vld [vmem:[#allocation8 + $0x28] sm:$0xf0] }
  0xf2   :  { %2114 = vmatpush.bf16.msra.mxu3 %v3217_v13  ;;  %3197 = vmatmul.msk.bf16.vlgmr.msrb.gmra.mxu2 %vm1311_vm0, %v4045_v50  ;;  %v3265_v50 = vor.u32 %v3731_v32, %v3264_v31  ;;  %v3229_v13 = vor.u32 %v3720_v2, %v3226_v3  ;;  %v3221_v21 = vor.u32 %v3718_v16, %v3218_v17  ;;  %v3732_v31 = vld [vmem:[#allocation8 + $0x94] sm:$0xf]  ;;  %v3274_v32 = vld [vmem:[#allocation8 + $0x98] sm:$0xf0] }
  0xf3   :  { %v3277_v40 = vor.u32 %v3732_v31, %v3274_v32  ;;  %v3760_v16 = vld [vmem:[#allocation8 + $0x174] sm:$0xf]  ;;  %v3448_v32 = vld [vmem:[#allocation8 + $0x1f0] sm:$0xf] }
  0xf5   :  { %2129 = vmatpush.bf16.msra.mxu1 %v3273_v28  ;;  %v3285_v28 = vor.u32 %v3734_v19, %v3282_v55  ;;  %v3378_v19 = vld [vmem:[#allocation8 + $0x168] sm:$0xf0] }
  0xf6   :  { %2115 = vmatpush.bf16.msra.mxu3 %v3209_v22  ;;  %v3759_v22 = vld [vmem:[#allocation8 + $0x164] sm:$0xf0] }
  0xf7   :  { %v3377_v29 = vor.u32 %v3759_v22, %v3376_v20  ;;  %v3756_v20 = vld [vmem:[#allocation8 + $0x154] sm:$0xf] }
  0xf8   :  { %v1450_v6 = vpop.f32.mrf.mxu0 }
  0xf9   :  { %2130 = vmatpush.bf16.msra.mxu1 %v3265_v50  ;;  %v1464_v15 = vpop.f32.mrf.mxu1  ;;  %v1451_v23 = vadd.f32 %v1450_v6, %v1437_v14  ;;  %2138 = vmatpush.bf16.msra.mxu2 %v3377_v29  ;;  %v3714_v50 = vld [vmem:[#allocation8 + $0x4] sm:$0xf]  ;;  %v3328_v14 = vld [vmem:[#allocation8 + $0x100] sm:$0xf]  ;;  %v3752_v29 = vld [vmem:[#allocation8 + $0x134] sm:$0xf] }
  0xfa   :  { %2116 = vmatpush.bf16.msra.mxu3 %v3201_v36  ;;  %v3757_v36 = vld [vmem:[#allocation8 + $0x154] sm:$0xf0]  ;;  %v3205_v46 = vor.u32 %v3714_v50, %v3202_v8  ;;  %v3440_v8 = vld [vmem:[#allocation8 + $0x1e0] sm:$0xf] }
  0xfb   :  { %v1465_v38 = vadd.f32 %v1464_v15, %v1451_v23  ;;  %v3369_v41 = vor.u32 %v3757_v36, %v3368_v33  ;;  %v3329_v15 = vor.u32 %v3747_v42, %v3328_v14  ;;  %v3777_v33 = vld [vmem:[#allocation8 + $0x1f4] sm:$0xf0]  ;;  %v3750_v36 = vld [vmem:[#allocation8 + $0x124] sm:$0xf]  ;;  %v3408_v14 = vld [vmem:[#allocation8 + $0x1a0] sm:$0xf] }
  0xfc   :  { %v3767_v42 = vld [vmem:[#allocation8 + $0x1a4] sm:$0xf0] }
  0xfd   :  { %2179 = vmatpush.bf16.msrb.mxu1 %v3325_v43  ;;  %2117 = vmatmul.bf16.vlgmr.msra.gmra.mxu3 %v4085_v44 }
  0xfe   :  { %2165 = vmatpush.bf16.msrb.mxu3 %v3261_v39  ;;  %2139 = vmatpush.bf16.msra.mxu2 %v3369_v41 }
 0x100   :  { %v1478_v25 = vpop.f32.mrf.mxu3  ;;  %v1452_v30 = vpop.f32.mrf.mxu0 }
 0x101   :  { %2180 = vmatpush.bf16.msrb.mxu1 %v3317_v52  ;;  %v1453_v39 = vadd.f32 %v1452_v30, %v1439_v24  ;;  %v1466_v43 = vpop.f32.mrf.mxu1  ;;  %v3360_v52 = vld [vmem:[#allocation8 + $0x140] sm:$0xf]  ;;  %v3754_v24 = vld [vmem:[#allocation8 + $0x144] sm:$0xf]  ;;  %v3354_v30 = vld [vmem:[#allocation8 + $0x138] sm:$0xf0] }
 0x102   :  { %2166 = vmatpush.bf16.msrb.mxu3 %v3253_v47  ;;  %v1479_v47 = vadd.f32 %v1478_v25, %v1465_v38  ;;  %v3361_v57 = vor.u32 %v3755_v60, %v3360_v52  ;;  %v3362_v25 = vld [vmem:[#allocation8 + $0x148] sm:$0xf0]  ;;  %v3357_v31 = vor.u32 %v3752_v29, %v3354_v30  ;;  %v3773_v60 = vld [vmem:[#allocation8 + $0x1d4] sm:$0xf0] }
 0x103   :  { %v1467_v48 = vadd.f32 %v1466_v43, %v1453_v39  ;;  %v3365_v27 = vor.u32 %v3754_v24, %v3362_v25  ;;  %v3346_v38 = vld [vmem:[#allocation8 + $0x128] sm:$0xf0]  ;;  %v3392_v24 = vld [vmem:[#allocation8 + $0x180] sm:$0xf]  ;;  %v3763_v25 = vld [vmem:[#allocation8 + $0x184] sm:$0xf0] }
 0x104   :  { %2140 = vmatpush.bf16.msra.mxu2 %v3361_v57  ;;  %v3349_v50 = vor.u32 %v3750_v36, %v3346_v38  ;;  %v3442_v36 = vld [vmem:[#allocation8 + $0x1e8] sm:$0xf0] }
 0x105   :  { %2181 = vmatpush.bf16.msrb.mxu1 %v3309_v61  ;;  %v1492_v34 = vpop.f32.mrf.mxu2  ;;  %v3353_v61 = vor.u32 %v3753_v59, %v3352_v58  ;;  %v3746_v59 = vld [vmem:[#allocation8 + $0x104] sm:$0xf] }
 0x106   :  { %2167 = vmatpush.bf16.msrb.mxu3 %v3245_v56  ;;  %v1493_v62 = vadd.f32 %v1492_v34, %v1479_v47  ;;  %v325_v34 = vperm.slane %v4073_v51, 2  ;;  %v3432_v47 = vld [vmem:[#allocation8 + $0x1d0] sm:$0xf] }
 0x107   :  { %v3433_v57 = vor.u32 %v3773_v60, %v3432_v47  ;;  %v3418_v47 = vld [vmem:[#allocation8 + $0x1b8] sm:$0xf0]  ;;  %v326_v60 = vperm.slane %v4073_v51, 3 }
 0x108   :  { %v1480_v53 = vpop.f32.mrf.mxu3  ;;  %v1506_v56 = vpop.f32.mrf.mxu0  ;;  %2141 = vmatpush.bf16.msra.mxu2 %v3353_v61  ;;  %v3330_v61 = vld [vmem:[#allocation8 + $0x108] sm:$0xf0] }
 0x109   :  { %2182 = vmatpush.bf16.msrb.mxu1 %v3301_v4  ;;  %v1481_v37 = vadd.f32 %v1480_v53, %v1467_v48  ;;  %v1507_v3 = vadd.f32 %v1506_v56, %v1493_v62  ;;  %v3333_v62 = vor.u32 %v3746_v59, %v3330_v61  ;;  %v3764_v61 = vld [vmem:[#allocation8 + $0x194] sm:$0xf] }
 0x10a   :  { %2168 = vmatpush.bf16.msrb.mxu3 %v3237_v0  ;;  %v3751_v0 = vld [vmem:[#allocation8 + $0x124] sm:$0xf0] }
 0x10b   :  { %v3345_v2 = vor.u32 %v3751_v0, %v3344_v63  ;;  %v1708_v7 = vmax.f32 %v1507_v3, 0.0  ;;  %v3771_v63 = vld [vmem:[#allocation8 + $0x1c4] sm:$0xf0] }
 0x10d   :  { %2183 = vmatpush.bf16.msrb.mxu1 %v3293_v18  ;;  %v1494_v1 = vpop.f32.mrf.mxu2  ;;  %2142 = vmatpush.bf16.msra.mxu2 %v3345_v2  ;;  %v3758_v18 = vld [vmem:[#allocation8 + $0x164] sm:$0xf] }
 0x10e   :  { %2169 = vmatpush.bf16.msrb.mxu3 %v3229_v13  ;;  %v1495_v4 = vadd.f32 %v1494_v1, %v1481_v37  ;;  %v3381_v55 = vor.u32 %v3758_v18, %v3378_v19  ;;  %v3424_v37 = vld [vmem:[#allocation8 + $0x1c0] sm:$0xf]  ;;  %v3400_v19 = vld [vmem:[#allocation8 + $0x190] sm:$0xf] }
 0x10f   :  { %v3425_v2 = vor.u32 %v3771_v63, %v3424_v37 }
 0x110   :  { %v1508_v5 = vpop.f32.mrf.mxu0 }
 0x111   :  { %2184 = vmatpush.bf16.msrb.mxu1 %v3285_v28  ;;  %v1509_v6 = vadd.f32 %v1508_v5, %v1495_v4  ;;  %2143 = vmatpush.bf16.msra.mxu2 %v3337_v12  ;;  %v3416_v5 = vld [vmem:[#allocation8 + $0x1b0] sm:$0xf] }
 0x112   :  { %2170 = vmatpush.bf16.msrb.mxu3 %v3221_v21  ;;  %v3370_v21 = vld [vmem:[#allocation8 + $0x158] sm:$0xf0] }
 0x113   :  { %v1712_v9 = vmax.f32 %v1509_v6, 0.0  ;;  %v3373_v23 = vor.u32 %v3756_v20, %v3370_v21  ;;  %v3769_v6 = vld [vmem:[#allocation8 + $0x1b4] sm:$0xf0] }
 0x114   :  { %v3417_v10 = vor.u32 %v3769_v6, %v3416_v5 }
 0x115   :  { %2185 = vmatpush.bf16.msrb.mxu1 %v3277_v40  ;;  %v1716_v13 = vpack.c.bf16 %v1712_v9, %v1708_v7  ;;  %2144 = vmatpush.bf16.msra.mxu2 %v3329_v15  ;;  %v3775_v40 = vld [vmem:[#allocation8 + $0x1e4] sm:$0xf0] }
 0x116   :  { %2171 = vmatpush.bf16.msrb.mxu3 %v3213_v35  ;;  %v3449_v35 = vor.u32 %v3777_v33, %v3448_v32  ;;  %v3441_v43 = vor.u32 %v3775_v40, %v3440_v8  ;;  %v3450_v32 = vld [vmem:[#allocation8 + $0x1f8] sm:$0xf0] }
 0x117   :  { %2131 = vmatmul.bf16.vlgmr.msra.gmra.mxu1 %v1716_v13 }
 0x118   :  { %2151 = vmatpush.bf16.msra.mxu0 %v3449_v35  ;;  %v3774_v35 = vld [vmem:[#allocation8 + $0x1e4] sm:$0xf] }
 0x119   :  { %2186 = vmatpush.bf16.msrb.mxu1 %v3269_v49  ;;  %v1520_v22 = vpop.f32.mrf.mxu1  ;;  %v3445_v38 = vor.u32 %v3774_v35, %v3442_v36  ;;  %v3789_v35 = vld [vmem:[#allocation10 + $0x58] sm:$0xff]  ;;  %v3788_v36 = vld [vmem:[#allocation10 + $0x50] sm:$0xff] }
 0x11a   :  { %2172 = vmatpush.bf16.msrb.mxu3 %v3205_v46  ;;  %v1521_v41 = vadd.f32 %v1520_v22, %v325_v34  ;;  %v3338_v46 = vld [vmem:[#allocation8 + $0x118] sm:$0xf0] }
 0x11b   :  { %v3341_v52 = vor.u32 %v3748_v54, %v3338_v46  ;;  %v3768_v46 = vld [vmem:[#allocation8 + $0x1b4] sm:$0xf] }
 0x11c   :  { %v1548_v26 = vpop.f32.mrf.mxu0  ;;  %2152 = vmatpush.bf16.msra.mxu0 %v3441_v43  ;;  %v3770_v43 = vld [vmem:[#allocation8 + $0x1c4] sm:$0xf] }
 0x11d   :  { %2173 = vmatmul.bf16.vlgmr.msrb.gmra.mxu3 %v4085_v44  ;;  %v3386_v44 = vld [vmem:[#allocation8 + $0x178] sm:$0xf0] }
 0x11e   :  { %v3389_v17 = vor.u32 %v3760_v16, %v3386_v44  ;;  %v3409_v44 = vor.u32 %v3767_v42, %v3408_v14 }
 0x120   :  { %2193 = vmatpush.bf16.msrb.mxu2 %v3389_v17  ;;  %v1534_v28 = vpop.f32.mrf.mxu3  ;;  %2153 = vmatpush.bf16.msra.mxu0 %v3433_v57  ;;  %v3766_v57 = vld [vmem:[#allocation8 + $0x1a4] sm:$0xf] }
 0x121   :  { %v1522_v39 = vpop.f32.mrf.mxu1  ;;  %v1535_v53 = vadd.f32 %v1534_v28, %v1521_v41 }
 0x122   :  { %v1523_v56 = vadd.f32 %v1522_v39, %v325_v34  ;;  %v3772_v39 = vld [vmem:[#allocation8 + $0x1d4] sm:$0xf] }
 0x123   :  { %v1549_v0 = vadd.f32 %v1548_v26, %v1535_v53 }
 0x124   :  { %2194 = vmatpush.bf16.msrb.mxu2 %v3381_v55  ;;  %v1550_v45 = vpop.f32.mrf.mxu0  ;;  %2154 = vmatpush.bf16.msra.mxu0 %v3425_v2  ;;  %v3765_v55 = vld [vmem:[#allocation8 + $0x194] sm:$0xf0] }
 0x125   :  { %v1562_v48 = vpop.f32.mrf.mxu2  ;;  %v3401_v22 = vor.u32 %v3765_v55, %v3400_v19 }
 0x126   :  { %v1563_v7 = vadd.f32 %v1562_v48, %v1549_v0  ;;  %v3421_v48 = vor.u32 %v3768_v46, %v3418_v47  ;;  %v3762_v0 = vld [vmem:[#allocation8 + $0x184] sm:$0xf] }
 0x127   :  { %2187 = vmatmul.bf16.vlgmr.msrb.gmra.mxu1 %v1716_v13 }
 0x128   :  { %2195 = vmatpush.bf16.msrb.mxu2 %v3373_v23  ;;  %v1536_v49 = vpop.f32.mrf.mxu3  ;;  %2155 = vmatpush.bf16.msra.mxu0 %v3417_v10 }
 0x129   :  { %v1537_v1 = vadd.f32 %v1536_v49, %v1523_v56 }
 0x12b   :  { %v1551_v9 = vadd.f32 %v1550_v45, %v1537_v1  ;;  %v3426_v45 = vld [vmem:[#allocation8 + $0x1c8] sm:$0xf0] }
 0x12c   :  { %2196 = vmatpush.bf16.msrb.mxu2 %v3365_v27  ;;  %v1604_v3 = vpop.f32.mrf.mxu0  ;;  %2156 = vmatpush.bf16.msra.mxu0 %v3409_v44  ;;  %v3393_v27 = vor.u32 %v3763_v25, %v3392_v24  ;;  %v3429_v54 = vor.u32 %v3770_v43, %v3426_v45  ;;  %v3394_v1 = vld [vmem:[#allocation8 + $0x188] sm:$0xf0]  ;;  %v3784_v24 = vld [vmem:[#allocation10 + $0x30] sm:$0xff] }
 0x12d   :  { %v1564_v11 = vpop.f32.mrf.mxu2  ;;  %v3397_v5 = vor.u32 %v3762_v0, %v3394_v1  ;;  %v3783_v25 = vld [vmem:[#allocation10 + $0x28] sm:$0xff] }
 0x12e   :  { %v1565_v15 = vadd.f32 %v1564_v11, %v1551_v9 }
 0x130   :  { %2197 = vmatpush.bf16.msrb.mxu2 %v3357_v31  ;;  %2157 = vmatpush.bf16.msra.mxu0 %v3401_v22  ;;  %v3776_v31 = vld [vmem:[#allocation8 + $0x1f4] sm:$0xf] }
 0x131   :  { %v3453_v33 = vor.u32 %v3776_v31, %v3450_v32  ;;  %v3779_v31 = vld [vmem:[#allocation10 + $0x8] sm:$0xff] }
 0x132   :  { %v3791_v32 = vld [vmem:[#allocation10 + $0x68] sm:$0xff] }
 0x134   :  { %2198 = vmatpush.bf16.msrb.mxu2 %v3349_v50  ;;  %v1606_v23 = vpop.f32.mrf.mxu0  ;;  %2158 = vmatpush.bf16.msra.mxu0 %v3393_v27  ;;  %v3434_v50 = vld [vmem:[#allocation8 + $0x1d8] sm:$0xf0] }
 0x135   :  { %v3437_v8 = vor.u32 %v3772_v39, %v3434_v50  ;;  %v3781_v27 = vld [vmem:[#allocation10 + $0x18] sm:$0xff] }
 0x138   :  { %2199 = vmatpush.bf16.msrb.mxu2 %v3341_v52  ;;  %2207 = vmatpush.bf16.msrb.mxu0 %v3453_v33  ;;  %v3778_v33 = vld [vmem:[#allocation10] sm:$0xff] }
 0x139   :  { %v1576_v58 = vpop.f32.mrf.mxu1 }
 0x13a   :  { %v1577_v12 = vadd.f32 %v1576_v58, %v1563_v7  ;;  %v3410_v58 = vld [vmem:[#allocation8 + $0x1a8] sm:$0xf0] }
 0x13b   :  { %v3413_v59 = vor.u32 %v3766_v57, %v3410_v58 }
 0x13c   :  { %2200 = vmatpush.bf16.msrb.mxu2 %v3333_v62  ;;  %2208 = vmatpush.bf16.msrb.mxu0 %v3445_v38  ;;  %v3402_v62 = vld [vmem:[#allocation8 + $0x198] sm:$0xf0] }
 0x13d   :  { %v3405_v63 = vor.u32 %v3764_v61, %v3402_v62 }
 0x140   :  { %v1590_v4 = vpop.f32.mrf.mxu3  ;;  %v1632_v40 = vpop.f32.mrf.mxu0  ;;  %2209 = vmatpush.bf16.msrb.mxu0 %v3437_v8  ;;  %v3787_v8 = vld [vmem:[#allocation10 + $0x48] sm:$0xff] }
 0x141   :  { %v1578_v13 = vpop.f32.mrf.mxu1  ;;  %v1591_v16 = vadd.f32 %v1590_v4, %v1577_v12 }
 0x142   :  { %v1579_v17 = vadd.f32 %v1578_v13, %v1565_v15 }
 0x143   :  { %v1605_v20 = vadd.f32 %v1604_v3, %v1591_v16 }
 0x144   :  { %2210 = vmatpush.bf16.msrb.mxu0 %v3429_v54 }
 0x145   :  { %v1709_v28 = vmax.f32 %v1605_v20, 0.0  ;;  %v1618_v30 = vpop.f32.mrf.mxu2 }
 0x146   :  { %v1619_v37 = vadd.f32 %v1618_v30, %v326_v60  ;;  %v3792_v30 = vld [vmem:[#allocation10 + $0x70] sm:$0xff] }
 0x148   :  { %v1592_v18 = vpop.f32.mrf.mxu3  ;;  %2211 = vmatpush.bf16.msrb.mxu0 %v3421_v48  ;;  %v1634_v53 = vpop.f32.mrf.mxu0  ;;  %v1633_v4 = vadd.f32 %v1632_v40, %v1619_v37  ;;  %v1783_v40 = vld [vmem:[%s4108_s4] sm:$0x3] }
 0x149   :  { %v1593_v21 = vadd.f32 %v1592_v18, %v1579_v17  ;;  %v1785_v43 = vperm.slane %v1783_v40, 0  ;;  %v1786_v1 = vperm.slane %v1783_v40, 1 }
 0x14b   :  { %v1607_v26 = vadd.f32 %v1606_v23, %v1593_v21  ;;  %v3785_v23 = vld [vmem:[#allocation10 + $0x38] sm:$0xff] }
 0x14c   :  { %2212 = vmatpush.bf16.msrb.mxu0 %v3413_v59  ;;  %2359 = vmatpush.bf16.msra.mxu3 %v3785_v23 }
 0x14d   :  { %v1713_v29 = vmax.f32 %v1607_v26, 0.0  ;;  %v1620_v41 = vpop.f32.mrf.mxu2  ;;  %v3782_v26 = vld [vmem:[#allocation10 + $0x20] sm:$0xff] }
 0x14e   :  { %v1621_v2 = vadd.f32 %v1620_v41, %v326_v60  ;;  %v3786_v41 = vld [vmem:[#allocation10 + $0x40] sm:$0xff] }
 0x14f   :  { %v1717_v34 = vpack.c.bf16 %v1713_v29, %v1709_v28  ;;  %v3793_v28 = vld [vmem:[#allocation10 + $0x78] sm:$0xff]  ;;  %v3780_v29 = vld [vmem:[#allocation10 + $0x10] sm:$0xff] }
 0x150   :  { %2213 = vmatpush.bf16.msrb.mxu0 %v3405_v63  ;;  %v1635_v7 = vadd.f32 %v1634_v53, %v1621_v2  ;;  %2360 = vmatpush.bf16.msra.mxu3 %v3784_v24 }
 0x151   :  { %2145 = vmatmul.bf16.vlgmr.msra.gmra.mxu2 %v1717_v34  ;;  %2373 = vmatpush.bf16.msra.mxu1 %v3793_v28 }
 0x154   :  { %2214 = vmatpush.bf16.msrb.mxu0 %v3397_v5  ;;  %2361 = vmatpush.bf16.msra.mxu3 %v3783_v25 }
 0x155   :  { %2374 = vmatpush.bf16.msra.mxu1 %v3792_v30 }
 0x158   :  { %2362 = vmatpush.bf16.msra.mxu3 %v3782_v26 }
 0x159   :  { %v1646_v49 = vpop.f32.mrf.mxu1  ;;  %2375 = vmatpush.bf16.msra.mxu1 %v3791_v32 }
 0x15a   :  { %v1647_v9 = vadd.f32 %v1646_v49, %v1633_v4 }
 0x15c   :  { %2363 = vmatpush.bf16.msra.mxu3 %v3781_v27 }
 0x160   :  { %v1660_v56 = vpop.f32.mrf.mxu3  ;;  %v1688_v6 = vpop.f32.mrf.mxu0  ;;  %2364 = vmatpush.bf16.msra.mxu3 %v3780_v29 }
 0x161   :  { %2201 = vmatmul.bf16.vlgmr.msrb.gmra.mxu2 %v1717_v34  ;;  %v1648_v51 = vpop.f32.mrf.mxu1  ;;  %v1661_v11 = vadd.f32 %v1660_v56, %v1647_v9  ;;  %v3790_v34 = vld [vmem:[#allocation10 + $0x60] sm:$0xff] }
 0x162   :  { %v1649_v12 = vadd.f32 %v1648_v51, %v1635_v7  ;;  %2376 = vmatpush.bf16.msra.mxu1 %v3790_v34 }
 0x164   :  { %2365 = vmatpush.bf16.msra.mxu3 %v3779_v31 }
 0x165   :  { %v1674_v52 = vpop.f32.mrf.mxu2 }
 0x166   :  { %v1675_v42 = vadd.f32 %v1674_v52, %v1661_v11  ;;  %2377 = vmatpush.bf16.msra.mxu1 %v3789_v35 }
 0x168   :  { %v1662_v10 = vpop.f32.mrf.mxu3  ;;  %v1690_v16 = vpop.f32.mrf.mxu0  ;;  %v1689_v44 = vadd.f32 %v1688_v6, %v1675_v42  ;;  %2366 = vmatpush.bf16.msra.mxu3 %v3778_v33 }
 0x169   :  { %v1663_v13 = vadd.f32 %v1662_v10, %v1649_v12 }
 0x16a   :  { %2378 = vmatpush.bf16.msra.mxu1 %v3788_v36 }
 0x16d   :  { %v1676_v3 = vpop.f32.mrf.mxu2 }
 0x16e   :  { %v1677_v15 = vadd.f32 %v1676_v3, %v1663_v13  ;;  %2379 = vmatpush.bf16.msra.mxu1 %v3787_v8 }
 0x170   :  { %v1691_v17 = vadd.f32 %v1690_v16, %v1677_v15 }
 0x172   :  { %2380 = vmatpush.bf16.msra.mxu1 %v3786_v41 }
 0x175   :  { %v1702_v14 = vpop.f32.mrf.mxu2 }
 0x176   :  { %v1703_v18 = vadd.f32 %v1702_v14, %v1689_v44 }
 0x178   :  { %v1710_v20 = vmax.f32 %v1703_v18, 0.0  ;;  %v3808_v18 = vld [vmem:[%s4110_s6] ss:$0 sm:$0xff] }
 0x17d   :  { %v1704_v19 = vpop.f32.mrf.mxu2 }
 0x17e   :  { %v1705_v55 = vadd.f32 %v1704_v19, %v1691_v17 }
 0x180   :  { %v1714_v21 = vmax.f32 %v1705_v55, 0.0  ;;  %v2118_v38 = vpop.f32.mrf.mxu3 }
 0x181   :  { %v2119_v48 = vadd.f32 %v2118_v38, %v1785_v43 }
 0x182   :  { %v1718_v22 = vpack.c.bf16 %v1714_v21, %v1710_v20 }
 0x184   :  { %2159 = vmatmul.bf16.vlgmr.msra.gmra.mxu0 %v1718_v22 }
 0x188   :  { %v2120_v45 = vpop.f32.mrf.mxu3 }
 0x189   :  { %v2121_v49 = vadd.f32 %v2120_v45, %v1785_v43 }
 0x194   :  { %2215 = vmatmul.bf16.vlgmr.msrb.gmra.mxu0 %v1718_v22  ;;  %v2132_v39 = vpop.f32.mrf.mxu1 }
 0x195   :  { %v2133_v52 = vadd.f32 %v2132_v39, %v2119_v48 }
 0x19c   :  { %v2134_v54 = vpop.f32.mrf.mxu1 }
 0x19d   :  { %v2135_v60 = vadd.f32 %v2134_v54, %v2121_v49 }
 0x1a0   :  { %v2174_v56 = vpop.f32.mrf.mxu3 }
 0x1a1   :  { %v2175_v5 = vadd.f32 %v2174_v56, %v1786_v1 }
 0x1a4   :  { %v2188_v59 = vpop.f32.mrf.mxu1 }
 0x1a5   :  { %v2189_v7 = vadd.f32 %v2188_v59, %v2175_v5 }
 0x1a8   :  { %v2176_v3 = vpop.f32.mrf.mxu3 }
 0x1a9   :  { %v2177_v6 = vadd.f32 %v2176_v3, %v1786_v1 }
 0x1ac   :  { %v2190_v51 = vpop.f32.mrf.mxu1 }
 0x1ad   :  { %v2191_v10 = vadd.f32 %v2190_v51, %v2177_v6 }
 0x1d4   :  { %v2146_v50 = vpop.f32.mrf.mxu2 }
 0x1d5   :  { %v2147_v53 = vadd.f32 %v2146_v50, %v2133_v52 }
 0x1dc   :  { %v2148_v46 = vpop.f32.mrf.mxu2 }
 0x1dd   :  { %v2149_v57 = vadd.f32 %v2148_v46, %v2135_v60 }
 0x1e4   :  { %v2202_v37 = vpop.f32.mrf.mxu2 }
 0x1e5   :  { %v2203_v11 = vadd.f32 %v2202_v37, %v2189_v7 }
 0x1ec   :  { %v2204_v9 = vpop.f32.mrf.mxu2 }
 0x1ed   :  { %v2205_v12 = vadd.f32 %v2204_v9, %v2191_v10 }
 0x201   :  { %v2160_v47 = vpop.f32.mrf.mxu0 }
 0x202   :  { %v2161_v58 = vadd.f32 %v2160_v47, %v2147_v53 }
 0x204   :  { %v2221_v63 = vmax.f32 %v2161_v58, 0.0 }
 0x209   :  { %v2162_v61 = vpop.f32.mrf.mxu0 }
 0x20a   :  { %v2163_v62 = vadd.f32 %v2162_v61, %v2149_v57 }
 0x20c   :  { %v2223_v0 = vmax.f32 %v2163_v62, 0.0 }
 0x20e   :  { %v2225_v2 = vpack.c.bf16 %v2223_v0, %v2221_v63 }
 0x210   :  { %2367 = vmatmul.bf16.vlgmr.msra.gmra.mxu3 %v2225_v2 }
 0x211   :  { %v2216_v4 = vpop.f32.mrf.mxu0 }
 0x212   :  { %v2217_v13 = vadd.f32 %v2216_v4, %v2203_v11 }
 0x214   :  { %v2222_v15 = vmax.f32 %v2217_v13, 0.0 }
 0x219   :  { %v2218_v14 = vpop.f32.mrf.mxu0 }
 0x21a   :  { %v2219_v42 = vadd.f32 %v2218_v14, %v2205_v12 }
 0x21c   :  { %v2224_v16 = vmax.f32 %v2219_v42, 0.0 }
 0x21e   :  { %v2226_v44 = vpack.c.bf16 %v2224_v16, %v2222_v15 }
 0x220   :  { %2381 = vmatmul.bf16.vlgmr.msra.gmra.mxu1 %v2226_v44 }
 0x293   :  { %v2368_v17 = vpop.f32.mrf.mxu3 }
 0x294   :  { %v2369_v19 = vadd.f32 %v3808_v18, %v2368_v17 }
 0x29b   :  { %v2370_v21 = vpop.f32.mrf.mxu3 }
 0x29c   :  { %v2371_v22 = vadd.f32 %v3808_v18, %v2370_v21 }
 0x29d   :  { %v2382_v55 = vpop.f32.mrf.mxu1 }
 0x29e   :  { %v2383_v20 = vadd.f32 %v2382_v55, %v2369_v19 }
 0x2a0   :  { %2387 = vst [vmem:[#allocation11] sm:$0xff] %v2383_v20 }
 0x2a5   :  { %v2384_v23 = vpop.f32.mrf.mxu1 }
 0x2a6   :  { %v2385_v24 = vadd.f32 %v2384_v23, %v2371_v22 }
 0x2a8   :  { %2388 = vst [vmem:[#allocation11 + $0x8] sm:$0xff] %v2385_v24 }
 0x2a9   :  { %2401 = dma.vmem_to_hbm [thread:$0]  %s2394_s10, 256, %s2396_s1, [#allocation4], %s3965_s13, %s3965_s13, %s3966_s14  }
 0x2aa   :  { %3959 = dma.done.wait [#allocation4], 256  }
 0x2ab   :  { %3960 = vsyncadd [#allocation4], 4294967040 }
 0x2ac   :  { %2406 = vsyncpa [#allocation3], 1 }
 0x2ad   :  { %2407 = vsyncpa [#allocation6], 1 }
 0x2ae   :  { %2408 = vsyncpa [#allocation9], 1 }
 0x2af   :  { %2409 = vsyncpa [#allocation4], 1 }

</bundles_post_ra>
